<compile_context>
chip_gen: v7x
topology: tpu7x:2x2x1
jax: 0.10.0
libtpu: 0.0.40
codegen_flags: <defaults>
</compile_context>

<pallas_src>
import functools

import numpy as np

import jax
import jax.numpy as jnp
from jax.experimental import pallas as pl
from jax.experimental.pallas import tpu as pltpu


# -----------------------------------------------------------------------------
# small helpers
# -----------------------------------------------------------------------------
def _ceil_to(x, m):
    return ((x + m - 1) // m) * m


def _vmem_limit_bytes():
    """Per-generation scoped-VMEM budget (v7x only has 64 MiB physical VMEM)."""
    try:
        kind = jax.devices()[0].device_kind.lower()
    except Exception:
        kind = ""
    if "v7" in kind:
        return 48 * 1024 * 1024        # keep well under v7x's 64 MiB physical VMEM
    return 100 * 1024 * 1024           # v4 / v5e / v6e have 128 MiB physical VMEM


def _spatial_tiling(Ho, Wo, max_tm=2048):
    """Pick TM patch-rows per grid step and the number of spatial steps S."""
    howo = Ho * Wo
    if howo <= max_tm:                     # one spatial step, pad rows for bf16 tiles
        tm = _ceil_to(howo, 16)
        return tm, 1, tm
    for th in range(Ho, 0, -1):            # row blocks: need (th*Wo) % 128 == 0
        if Ho % th == 0 and th * Wo <= max_tm and (th * Wo) % 128 == 0:
            return th * Wo, Ho // th, howo
    tm = _ceil_to(howo, 16)                # fallback: single (large) spatial step
    return tm, 1, tm


def _adaptive_pool_matrix(Ho, Wo, E, cols):
    """(E*E, cols) f32 matrix implementing nn.AdaptiveAvgPool2d((E, E)).

    Columns >= Ho*Wo (padded patch rows) stay zero, so row padding is harmless.
    """
    P = np.zeros((E * E, cols), np.float32)
    for e1 in range(E):
        h0, h1 = (e1 * Ho) // E, -(-((e1 + 1) * Ho) // E)
        for e2 in range(E):
            w0, w1 = (e2 * Wo) // E, -(-((e2 + 1) * Wo) // E)
            val = 1.0 / ((h1 - h0) * (w1 - w0))
            for ih in range(h0, h1):
                for iw in range(w0, w1):
                    P[e1 * E + e2, ih * Wo + iw] = val
    return jnp.asarray(P)


def _im2col_s2p1(images_nchw, Ho, Wo, rows_pad, k_pad):
    """3x3 / stride-2 / pad-1 patches as a lane-dense (B, rows_pad, k_pad) bf16 tensor."""
    B, Cin, H, W = images_nchw.shape
    xp = jnp.pad(images_nchw.astype(jnp.float32),
                 ((0, 0), (0, 0), (1, 1), (1, 1)))
    taps = [xp[:, :, di:di + 2 * Ho:2, dj:dj + 2 * Wo:2]      # (B, Cin, Ho, Wo)
            for di in range(3) for dj in range(3)]
    pat = jnp.stack(taps, axis=1)                             # (B, 9, Cin, Ho, Wo)
    pat = jnp.transpose(pat, (0, 3, 4, 1, 2))                 # (B, Ho, Wo, 9, Cin)
    pat = pat.reshape(B, Ho * Wo, 9 * Cin)                    # K index = tap*Cin + c
    pat = jnp.pad(pat, ((0, 0), (0, rows_pad - Ho * Wo), (0, k_pad - 9 * Cin)))
    return pat.astype(jnp.bfloat16)


# -----------------------------------------------------------------------------
# Fused kernel: conv(3x3,s2,p1)+ReLU -> adaptive avg pool -> fc -> sigmoid
# grid = (batch_tiles, spatial_tiles); pooled partial sums live in VMEM scratch.
# -----------------------------------------------------------------------------
def _fused_cnn_kernel(x_ref, wconv_ref, bconv_ref, pool_ref, wfc_ref, bfc_ref,
                      out_ref, pooled_ref, *, BT, TM, EE, Cenc, Npad):
    s = pl.program_id(1)

    @pl.when(s == 0)
    def _init():
        pooled_ref[...] = jnp.zeros_like(pooled_ref)

    # ---- conv: ONE K=32 MXU matmul covering the whole (BT, TM) tile ---------
    kpad = x_ref.shape[-1]
    x2 = x_ref[...].reshape(BT * TM, kpad)               # leading-dim merge (TM % 16 == 0)
    feat = jnp.dot(x2, wconv_ref[...], preferred_element_type=jnp.float32)
    feat = jnp.maximum(feat + bconv_ref[...], 0.0)       # (BT*TM, Cenc) f32

    # ---- adaptive average-pool partial sums (f32 coefficients) --------------
    pool_blk = pool_ref[...]                             # (EE, TM) f32 slab for step s
    for b in range(BT):                                  # static unroll, BT small
        feat_b = feat[b * TM:(b + 1) * TM, :]
        pooled_ref[b] += jnp.dot(pool_blk, feat_b,
                                 preferred_element_type=jnp.float32)

    # ---- finalize once per batch tile: fc (NCHW flatten folded) + sigmoid ---
    @pl.when(s == pl.num_programs(1) - 1)
    def _fin():
        acc = jnp.zeros((BT, Npad), jnp.float32)
        for t in range(EE):                              # M=BT, K=Cenc matmuls
            acc = acc + jnp.dot(pooled_ref[:, t, :].astype(jnp.bfloat16),
                                wfc_ref[t], preferred_element_type=jnp.float32)
        out_ref[...] = jax.nn.sigmoid(acc + bfc_ref[...])


def _fused_forward(patches, w_conv, b_conv, pool_mat, w_fc, b_fc,
                   *, BT, TM, S, EE, Cenc, Npad):
    B = patches.shape[0]
    kpad = patches.shape[-1]
    kernel = functools.partial(_fused_cnn_kernel, BT=BT, TM=TM, EE=EE,
                               Cenc=Cenc, Npad=Npad)
    grid_spec = pltpu.PrefetchScalarGridSpec(
        num_scalar_prefetch=0,
        grid=(B // BT, S),
        in_specs=[
            pl.BlockSpec((BT, TM, kpad), lambda bt, s: (bt, s, 0)),   # patches
            pl.BlockSpec(w_conv.shape, lambda bt, s: (0, 0)),         # conv weight
            pl.BlockSpec(b_conv.shape, lambda bt, s: (0, 0)),         # conv bias
            pl.BlockSpec((EE, TM), lambda bt, s: (0, s)),             # pool slab
            pl.BlockSpec(w_fc.shape, lambda bt, s: (0, 0, 0)),        # fc weight
            pl.BlockSpec(b_fc.shape, lambda bt, s: (0, 0)),           # fc bias
        ],
        out_specs=pl.BlockSpec((BT, Npad), lambda bt, s: (bt, 0)),
        scratch_shapes=[pltpu.VMEM((BT, EE, Cenc), jnp.float32)],     # pooled sums
    )
    return pl.pallas_call(
        kernel,
        out_shape=jax.ShapeDtypeStruct((B, Npad), jnp.float32),
        grid_spec=grid_spec,
        compiler_params=pltpu.CompilerParams(
            dimension_semantics=("parallel", "arbitrary"),
            vmem_limit_bytes=_vmem_limit_bytes(),
        ),
    )(patches, w_conv, b_conv, pool_mat, w_fc, b_fc)


# -----------------------------------------------------------------------------
# Model wrapper
# -----------------------------------------------------------------------------
class CNNModelPallas:
    """Pallas implementation of CNNModel.forward (synthetic encoder weights)."""

    def __init__(self, encoder_dim, unique_tags, encoded_image_size, key):
        self.encoder_dim = encoder_dim
        self.unique_tags = unique_tags
        self.enc_image_size = encoded_image_size
        self.n_pad = _ceil_to(unique_tags, 128)         # lane-dense fc output
        cin = 3
        E = encoded_image_size
        EE = E * E
        self.k_pad = _ceil_to(9 * cin, 32)              # im2col K (27) -> 32
        k1, k2, k3, k4 = jax.random.split(key, 4)

        # stand-in encoder conv: 3 -> encoder_dim, kernel 3x3, stride 2, pad 1
        self.conv_w = jax.random.normal(k1, (3, 3, cin, encoder_dim),
                                        jnp.float32) * 0.1            # HWIO
        self.conv_b = jax.random.normal(k2, (encoder_dim,), jnp.float32) * 0.1
        fc_in = encoder_dim * EE
        self.fc_w = jax.random.normal(k3, (fc_in, unique_tags), jnp.float32) * 0.05
        self.fc_b = jax.random.normal(k4, (unique_tags,), jnp.float32) * 0.05

        # ---- kernel-side parameter layouts (built once at init) -------------
        # conv weight as one (Kpad, Cenc) bf16 matrix, K index = tap*Cin + c.
        # (Ideally Cenc is chosen as a multiple of 128/256 for the MXU.)
        wc = self.conv_w.reshape(9 * cin, encoder_dim)
        w_conv = jnp.zeros((self.k_pad, encoder_dim), jnp.float32).at[:9 * cin].set(wc)
        self.w_conv_k = w_conv.astype(jnp.bfloat16)
        self.b_conv_k = self.conv_b.reshape(1, encoder_dim).astype(jnp.float32)
        # fc weight with the NCHW flatten folded in: wfc[s, c, n] = fc_w[c*EE+s, n],
        # padded to 128 output lanes.
        w3 = jnp.transpose(self.fc_w.reshape(encoder_dim, EE, unique_tags),
                           (1, 0, 2))                                  # [s, c, n]
        w_fc = jnp.zeros((EE, encoder_dim, self.n_pad), jnp.float32)
        self.w_fc_k = w_fc.at[:, :, :unique_tags].set(w3).astype(jnp.bfloat16)
        self.b_fc_k = jnp.zeros((1, self.n_pad),
                                jnp.float32).at[0, :unique_tags].set(self.fc_b)

    @functools.partial(jax.jit, static_argnums=0)
    def forward(self, images_nchw):
        B, Cin, H, W = images_nchw.shape
        assert Cin == 3
        E = self.enc_image_size
        EE = E * E
        Ho = (H - 1) // 2 + 1                       # conv: k=3, s=2, p=1
        Wo = (W - 1) // 2 + 1
        TM, S, rows_pad = _spatial_tiling(Ho, Wo)

        # cheap, lane-dense wrapper-side layout plumbing (no compute hoisting)
        patches = _im2col_s2p1(images_nchw, Ho, Wo, rows_pad, self.k_pad)
        pool_mat = _adaptive_pool_matrix(Ho, Wo, E, rows_pad)

        # batch tile: 8 keeps the out store a full (8,128) tile; else whole batch
        BT = 8 if B % 8 == 0 else B
        out = _fused_forward(patches, self.w_conv_k, self.b_conv_k, pool_mat,
                             self.w_fc_k, self.b_fc_k,
                             BT=BT, TM=TM, S=S, EE=EE,
                             Cenc=self.encoder_dim, Npad=self.n_pad)
        return out[:, :self.unique_tags]


# -----------------------------------------------------------------------------
# Pure-JAX reference (mirrors the PyTorch graph with the same synthetic weights)
# -----------------------------------------------------------------------------
def _reference_forward(model, images_nchw):
    E = model.enc_image_size
    x = images_nchw.astype(jnp.float32)
    y = jax.lax.conv_general_dilated(
        x, model.conv_w, window_strides=(2, 2), padding=((1, 1), (1, 1)),
        dimension_numbers=("NCHW", "HWIO", "NCHW"))
    y = jnp.maximum(y + model.conv_b.reshape(1, -1, 1, 1), 0.0)
    B, C, Ho, Wo = y.shape
    rows = []
    for i in range(E):                               # true adaptive avg pool
        h0, h1 = (i * Ho) // E, -(-((i + 1) * Ho) // E)
        cols = []
        for j in range(E):
            w0, w1 = (j * Wo) // E, -(-((j + 1) * Wo) // E)
            cols.append(y[:, :, h0:h1, w0:w1].mean(axis=(2, 3)))
        rows.append(jnp.stack(cols, axis=-1))
    pooled = jnp.stack(rows, axis=-2)                # (B, C, E, E)
    flat = pooled.reshape(B, C * E * E)              # NCHW flatten
    return jax.nn.sigmoid(flat @ model.fc_w + model.fc_b)


if __name__ == "__main__":
    key = jax.random.PRNGKey(0)
    k_param, k_img = jax.random.split(key)

    batch, image_size = 2, 16
    encoder_dim, unique_tags, enc_image_size = 32, 10, 4

    model = CNNModelPallas(encoder_dim, unique_tags, enc_image_size, k_param)
    images = jax.random.normal(k_img, (batch, 3, image_size, image_size),
                               jnp.float32)

    out = jax.block_until_ready(model.forward(images))
    assert out.shape == (batch, unique_tags)
    assert bool(jnp.all(jnp.isfinite(out)))
    assert bool(jnp.all((out >= 0.0) & (out <= 1.0)))

    ref = jax.block_until_ready(_reference_forward(model, images))
    max_err = float(jnp.max(jnp.abs(out - ref)))
    assert max_err < 2.5e-2, f"mismatch vs reference: {max_err}"

    print("KERNEL_OK")
</pallas_src>

<mosaic_0001>
module attributes {stable_mosaic.version = 11 : i64} {
  func.func @_fused_cnn_kernel(%arg0: i32, %arg1: i32, %arg2: memref<2x64x32xbf16, #tpu.memory_space<vmem>>, %arg3: memref<32x32xbf16, #tpu.memory_space<vmem>>, %arg4: memref<1x32xf32, #tpu.memory_space<vmem>>, %arg5: memref<16x64xf32, #tpu.memory_space<vmem>>, %arg6: memref<16x32x128xbf16, #tpu.memory_space<vmem>>, %arg7: memref<1x128xf32, #tpu.memory_space<vmem>>, %arg8: memref<2x128xf32, #tpu.memory_space<vmem>>, %arg9: memref<2x16x32xf32, #tpu.memory_space<vmem>>) attributes {dimension_semantics = [#tpu.dimension_semantics<parallel>, #tpu.dimension_semantics<arbitrary>], iteration_bounds = array<i64: 1, 1>, scalar_prefetch = 0 : i64, scratch_operands = 1 : i64, tpu.core_type = #tpu.core_type<tc>, window_params = [{transform_indices = @transform_0, window_bounds = array<i64: 2, 64, 32>}, {pipeline_mode = #tpu.pipeline_mode<synchronous>, transform_indices = @transform_1, window_bounds = array<i64: 32, 32>}, {pipeline_mode = #tpu.pipeline_mode<synchronous>, transform_indices = @transform_2, window_bounds = array<i64: 1, 32>}, {transform_indices = @transform_3, window_bounds = array<i64: 16, 64>}, {pipeline_mode = #tpu.pipeline_mode<synchronous>, transform_indices = @transform_4, window_bounds = array<i64: 16, 32, 128>}, {pipeline_mode = #tpu.pipeline_mode<synchronous>, transform_indices = @transform_5, window_bounds = array<i64: 1, 128>}, {transform_indices = @transform_6, window_bounds = array<i64: 2, 128>}]} {
    %c0_i32 = arith.constant 0 : i32
    %0 = arith.cmpi eq, %arg1, %c0_i32 : i32
    %1 = arith.extui %0 : i1 to i32
    %c0_i32_0 = arith.constant 0 : i32
    %2 = arith.cmpi ne, %1, %c0_i32_0 : i32
    scf.if %2 {
      %cst_25 = arith.constant 0.000000e+00 : f32
      %32 = vector.broadcast %cst_25 : f32 to vector<2x16x32xf32>
      %c0_26 = arith.constant 0 : index
      %c0_27 = arith.constant 0 : index
      %c0_28 = arith.constant 0 : index
      %33 = vector.load %arg9[%c0_26, %c0_27, %c0_28] : memref<2x16x32xf32, #tpu.memory_space<vmem>>, vector<2x16x32xf32>
      tpu.vector_store %arg9[%c0_26, %c0_27, %c0_28], %32 {strides = array<i32>} : memref<2x16x32xf32, #tpu.memory_space<vmem>>, vector<2x16x32xf32>,
    } else {
    }
    %c0 = arith.constant 0 : index
    %c0_1 = arith.constant 0 : index
    %c0_2 = arith.constant 0 : index
    %3 = vector.load %arg2[%c0, %c0_1, %c0_2] : memref<2x64x32xbf16, #tpu.memory_space<vmem>>, vector<2x64x32xbf16>
    %4 = vector.shape_cast %3 : vector<2x64x32xbf16> to vector<128x32xbf16>
    %c0_3 = arith.constant 0 : index
    %c0_4 = arith.constant 0 : index
    %5 = vector.load %arg3[%c0_3, %c0_4] : memref<32x32xbf16, #tpu.memory_space<vmem>>, vector<32x32xbf16>
    %cst = arith.constant dense<0.000000e+00> : vector<128x32xf32>
    %6 = tpu.matmul %4, %5, %cst {dimension_numbers = #tpu.dot_dimension_numbers<[1], [0], [0], [1], [0, 0, 1, 1], [], []>} : vector<128x32xbf16>, vector<32x32xbf16>, vector<128x32xf32> -> vector<128x32xf32>
    %c0_5 = arith.constant 0 : index
    %c0_6 = arith.constant 0 : index
    %7 = vector.load %arg4[%c0_5, %c0_6] : memref<1x32xf32, #tpu.memory_space<vmem>>, vector<1x32xf32>
    %8 = vector.broadcast %7 : vector<1x32xf32> to vector<128x32xf32>
    %9 = arith.addf %6, %8 : vector<128x32xf32>
    %cst_7 = arith.constant 0.000000e+00 : f32
    %10 = vector.broadcast %cst_7 : f32 to vector<128x32xf32>
    %11 = arith.maximumf %9, %10 : vector<128x32xf32>
    %c0_8 = arith.constant 0 : index
    %c0_9 = arith.constant 0 : index
    %12 = vector.load %arg5[%c0_8, %c0_9] : memref<16x64xf32, #tpu.memory_space<vmem>>, vector<16x64xf32>
    %13 = vector.extract_strided_slice %11 {offsets = [0, 0], sizes = [64, 32], strides = [1, 1]} : vector<128x32xf32> to vector<64x32xf32>
    %c0_10 = arith.constant 0 : index
    %c0_11 = arith.constant 0 : index
    %c0_12 = arith.constant 0 : index
    %14 = vector.load %arg9[%c0_10, %c0_11, %c0_12] : memref<2x16x32xf32, #tpu.memory_space<vmem>>, vector<1x16x32xf32>
    %15 = vector.shape_cast %14 : vector<1x16x32xf32> to vector<16x32xf32>
    %cst_13 = arith.constant dense<0.000000e+00> : vector<16x32xf32>
    %16 = tpu.matmul %12, %13, %cst_13 {dimension_numbers = #tpu.dot_dimension_numbers<[1], [0], [0], [1], [0, 0, 1, 1], [], []>} : vector<16x64xf32>, vector<64x32xf32>, vector<16x32xf32> -> vector<16x32xf32>
    %17 = arith.addf %15, %16 : vector<16x32xf32>
    %c0_14 = arith.constant 0 : index
    %c0_15 = arith.constant 0 : index
    %c0_16 = arith.constant 0 : index
    %18 = vector.load %arg9[%c0_14, %c0_15, %c0_16] : memref<2x16x32xf32, #tpu.memory_space<vmem>>, vector<1x16x32xf32>
    %19 = vector.shape_cast %18 : vector<1x16x32xf32> to vector<16x32xf32>
    %20 = vector.shape_cast %17 : vector<16x32xf32> to vector<1x16x32xf32>
    tpu.vector_store %arg9[%c0_14, %c0_15, %c0_16], %20 {strides = array<i32>} : memref<2x16x32xf32, #tpu.memory_space<vmem>>, vector<1x16x32xf32>,
    %21 = vector.extract_strided_slice %11 {offsets = [64, 0], sizes = [64, 32], strides = [1, 1]} : vector<128x32xf32> to vector<64x32xf32>
    %c1 = arith.constant 1 : index
    %c0_17 = arith.constant 0 : index
    %c0_18 = arith.constant 0 : index
    %22 = vector.load %arg9[%c1, %c0_17, %c0_18] : memref<2x16x32xf32, #tpu.memory_space<vmem>>, vector<1x16x32xf32>
    %23 = vector.shape_cast %22 : vector<1x16x32xf32> to vector<16x32xf32>
    %cst_19 = arith.constant dense<0.000000e+00> : vector<16x32xf32>
    %24 = tpu.matmul %12, %21, %cst_19 {dimension_numbers = #tpu.dot_dimension_numbers<[1], [0], [0], [1], [0, 0, 1, 1], [], []>} : vector<16x64xf32>, vector<64x32xf32>, vector<16x32xf32> -> vector<16x32xf32>
    %25 = arith.addf %23, %24 : vector<16x32xf32>
    %c1_20 = arith.constant 1 : index
    %c0_21 = arith.constant 0 : index
    %c0_22 = arith.constant 0 : index
    %26 = vector.load %arg9[%c1_20, %c0_21, %c0_22] : memref<2x16x32xf32, #tpu.memory_space<vmem>>, vector<1x16x32xf32>
    %27 = vector.shape_cast %26 : vector<1x16x32xf32> to vector<16x32xf32>
    %28 = vector.shape_cast %25 : vector<16x32xf32> to vector<1x16x32xf32>
    tpu.vector_store %arg9[%c1_20, %c0_21, %c0_22], %28 {strides = array<i32>} : memref<2x16x32xf32, #tpu.memory_space<vmem>>, vector<1x16x32xf32>,
    %c0_i32_23 = arith.constant 0 : i32
    %29 = arith.cmpi eq, %arg1, %c0_i32_23 : i32
    %30 = arith.extui %29 : i1 to i32
    %c0_i32_24 = arith.constant 0 : i32
    %31 = arith.cmpi ne, %30, %c0_i32_24 : i32
    scf.if %31 {
      %cst_25 = arith.constant 0.000000e+00 : f32
      %32 = vector.broadcast %cst_25 : f32 to vector<2x128xf32>
      %c0_26 = arith.constant 0 : index
      %c0_27 = arith.constant 0 : index
      %c0_28 = arith.constant 0 : index
      %33 = vector.load %arg9[%c0_26, %c0_27, %c0_28] : memref<2x16x32xf32, #tpu.memory_space<vmem>>, vector<2x1x32xf32>
      %34 = vector.shape_cast %33 : vector<2x1x32xf32> to vector<2x32xf32>
      %35 = arith.truncf %34 : vector<2x32xf32> to vector<2x32xbf16>
      %c0_29 = arith.constant 0 : index
      %c0_30 = arith.constant 0 : index
      %c0_31 = arith.constant 0 : index
      %36 = vector.load %arg6[%c0_29, %c0_30, %c0_31] : memref<16x32x128xbf16, #tpu.memory_space<vmem>>, vector<1x32x128xbf16>
      %37 = vector.shape_cast %36 : vector<1x32x128xbf16> to vector<32x128xbf16>
      %cst_32 = arith.constant dense<0.000000e+00> : vector<2x128xf32>
      %38 = tpu.matmul %35, %37, %cst_32 {dimension_numbers = #tpu.dot_dimension_numbers<[1], [0], [0], [1], [0, 0, 1, 1], [], []>} : vector<2x32xbf16>, vector<32x128xbf16>, vector<2x128xf32> -> vector<2x128xf32>
      %39 = arith.addf %32, %38 : vector<2x128xf32>
      %c0_33 = arith.constant 0 : index
      %c1_34 = arith.constant 1 : index
      %c0_35 = arith.constant 0 : index
      %40 = vector.load %arg9[%c0_33, %c1_34, %c0_35] : memref<2x16x32xf32, #tpu.memory_space<vmem>>, vector<2x1x32xf32>
      %41 = vector.shape_cast %40 : vector<2x1x32xf32> to vector<2x32xf32>
      %42 = arith.truncf %41 : vector<2x32xf32> to vector<2x32xbf16>
      %c1_36 = arith.constant 1 : index
      %c0_37 = arith.constant 0 : index
      %c0_38 = arith.constant 0 : index
      %43 = vector.load %arg6[%c1_36, %c0_37, %c0_38] : memref<16x32x128xbf16, #tpu.memory_space<vmem>>, vector<1x32x128xbf16>
      %44 = vector.shape_cast %43 : vector<1x32x128xbf16> to vector<32x128xbf16>
      %cst_39 = arith.constant dense<0.000000e+00> : vector<2x128xf32>
      %45 = tpu.matmul %42, %44, %cst_39 {dimension_numbers = #tpu.dot_dimension_numbers<[1], [0], [0], [1], [0, 0, 1, 1], [], []>} : vector<2x32xbf16>, vector<32x128xbf16>, vector<2x128xf32> -> vector<2x128xf32>
      %46 = arith.addf %39, %45 : vector<2x128xf32>
      %c0_40 = arith.constant 0 : index
      %c2 = arith.constant 2 : index
      %c0_41 = arith.constant 0 : index
      %47 = vector.load %arg9[%c0_40, %c2, %c0_41] : memref<2x16x32xf32, #tpu.memory_space<vmem>>, vector<2x1x32xf32>
      %48 = vector.shape_cast %47 : vector<2x1x32xf32> to vector<2x32xf32>
      %49 = arith.truncf %48 : vector<2x32xf32> to vector<2x32xbf16>
      %c2_42 = arith.constant 2 : index
      %c0_43 = arith.constant 0 : index
      %c0_44 = arith.constant 0 : index
      %50 = vector.load %arg6[%c2_42, %c0_43, %c0_44] : memref<16x32x128xbf16, #tpu.memory_space<vmem>>, vector<1x32x128xbf16>
      %51 = vector.shape_cast %50 : vector<1x32x128xbf16> to vector<32x128xbf16>
      %cst_45 = arith.constant dense<0.000000e+00> : vector<2x128xf32>
      %52 = tpu.matmul %49, %51, %cst_45 {dimension_numbers = #tpu.dot_dimension_numbers<[1], [0], [0], [1], [0, 0, 1, 1], [], []>} : vector<2x32xbf16>, vector<32x128xbf16>, vector<2x128xf32> -> vector<2x128xf32>
      %53 = arith.addf %46, %52 : vector<2x128xf32>
      %c0_46 = arith.constant 0 : index
      %c3 = arith.constant 3 : index
      %c0_47 = arith.constant 0 : index
      %54 = vector.load %arg9[%c0_46, %c3, %c0_47] : memref<2x16x32xf32, #tpu.memory_space<vmem>>, vector<2x1x32xf32>
      %55 = vector.shape_cast %54 : vector<2x1x32xf32> to vector<2x32xf32>
      %56 = arith.truncf %55 : vector<2x32xf32> to vector<2x32xbf16>
      %c3_48 = arith.constant 3 : index
      %c0_49 = arith.constant 0 : index
      %c0_50 = arith.constant 0 : index
      %57 = vector.load %arg6[%c3_48, %c0_49, %c0_50] : memref<16x32x128xbf16, #tpu.memory_space<vmem>>, vector<1x32x128xbf16>
      %58 = vector.shape_cast %57 : vector<1x32x128xbf16> to vector<32x128xbf16>
      %cst_51 = arith.constant dense<0.000000e+00> : vector<2x128xf32>
      %59 = tpu.matmul %56, %58, %cst_51 {dimension_numbers = #tpu.dot_dimension_numbers<[1], [0], [0], [1], [0, 0, 1, 1], [], []>} : vector<2x32xbf16>, vector<32x128xbf16>, vector<2x128xf32> -> vector<2x128xf32>
      %60 = arith.addf %53, %59 : vector<2x128xf32>
      %c0_52 = arith.constant 0 : index
      %c4 = arith.constant 4 : index
      %c0_53 = arith.constant 0 : index
      %61 = vector.load %arg9[%c0_52, %c4, %c0_53] : memref<2x16x32xf32, #tpu.memory_space<vmem>>, vector<2x1x32xf32>
      %62 = vector.shape_cast %61 : vector<2x1x32xf32> to vector<2x32xf32>
      %63 = arith.truncf %62 : vector<2x32xf32> to vector<2x32xbf16>
      %c4_54 = arith.constant 4 : index
      %c0_55 = arith.constant 0 : index
      %c0_56 = arith.constant 0 : index
      %64 = vector.load %arg6[%c4_54, %c0_55, %c0_56] : memref<16x32x128xbf16, #tpu.memory_space<vmem>>, vector<1x32x128xbf16>
      %65 = vector.shape_cast %64 : vector<1x32x128xbf16> to vector<32x128xbf16>
      %cst_57 = arith.constant dense<0.000000e+00> : vector<2x128xf32>
      %66 = tpu.matmul %63, %65, %cst_57 {dimension_numbers = #tpu.dot_dimension_numbers<[1], [0], [0], [1], [0, 0, 1, 1], [], []>} : vector<2x32xbf16>, vector<32x128xbf16>, vector<2x128xf32> -> vector<2x128xf32>
      %67 = arith.addf %60, %66 : vector<2x128xf32>
      %c0_58 = arith.constant 0 : index
      %c5 = arith.constant 5 : index
      %c0_59 = arith.constant 0 : index
      %68 = vector.load %arg9[%c0_58, %c5, %c0_59] : memref<2x16x32xf32, #tpu.memory_space<vmem>>, vector<2x1x32xf32>
      %69 = vector.shape_cast %68 : vector<2x1x32xf32> to vector<2x32xf32>
      %70 = arith.truncf %69 : vector<2x32xf32> to vector<2x32xbf16>
      %c5_60 = arith.constant 5 : index
      %c0_61 = arith.constant 0 : index
      %c0_62 = arith.constant 0 : index
      %71 = vector.load %arg6[%c5_60, %c0_61, %c0_62] : memref<16x32x128xbf16, #tpu.memory_space<vmem>>, vector<1x32x128xbf16>
      %72 = vector.shape_cast %71 : vector<1x32x128xbf16> to vector<32x128xbf16>
      %cst_63 = arith.constant dense<0.000000e+00> : vector<2x128xf32>
      %73 = tpu.matmul %70, %72, %cst_63 {dimension_numbers = #tpu.dot_dimension_numbers<[1], [0], [0], [1], [0, 0, 1, 1], [], []>} : vector<2x32xbf16>, vector<32x128xbf16>, vector<2x128xf32> -> vector<2x128xf32>
      %74 = arith.addf %67, %73 : vector<2x128xf32>
      %c0_64 = arith.constant 0 : index
      %c6 = arith.constant 6 : index
      %c0_65 = arith.constant 0 : index
      %75 = vector.load %arg9[%c0_64, %c6, %c0_65] : memref<2x16x32xf32, #tpu.memory_space<vmem>>, vector<2x1x32xf32>
      %76 = vector.shape_cast %75 : vector<2x1x32xf32> to vector<2x32xf32>
      %77 = arith.truncf %76 : vector<2x32xf32> to vector<2x32xbf16>
      %c6_66 = arith.constant 6 : index
      %c0_67 = arith.constant 0 : index
      %c0_68 = arith.constant 0 : index
      %78 = vector.load %arg6[%c6_66, %c0_67, %c0_68] : memref<16x32x128xbf16, #tpu.memory_space<vmem>>, vector<1x32x128xbf16>
      %79 = vector.shape_cast %78 : vector<1x32x128xbf16> to vector<32x128xbf16>
      %cst_69 = arith.constant dense<0.000000e+00> : vector<2x128xf32>
      %80 = tpu.matmul %77, %79, %cst_69 {dimension_numbers = #tpu.dot_dimension_numbers<[1], [0], [0], [1], [0, 0, 1, 1], [], []>} : vector<2x32xbf16>, vector<32x128xbf16>, vector<2x128xf32> -> vector<2x128xf32>
      %81 = arith.addf %74, %80 : vector<2x128xf32>
      %c0_70 = arith.constant 0 : index
      %c7 = arith.constant 7 : index
      %c0_71 = arith.constant 0 : index
      %82 = vector.load %arg9[%c0_70, %c7, %c0_71] : memref<2x16x32xf32, #tpu.memory_space<vmem>>, vector<2x1x32xf32>
      %83 = vector.shape_cast %82 : vector<2x1x32xf32> to vector<2x32xf32>
      %84 = arith.truncf %83 : vector<2x32xf32> to vector<2x32xbf16>
      %c7_72 = arith.constant 7 : index
      %c0_73 = arith.constant 0 : index
      %c0_74 = arith.constant 0 : index
      %85 = vector.load %arg6[%c7_72, %c0_73, %c0_74] : memref<16x32x128xbf16, #tpu.memory_space<vmem>>, vector<1x32x128xbf16>
      %86 = vector.shape_cast %85 : vector<1x32x128xbf16> to vector<32x128xbf16>
      %cst_75 = arith.constant dense<0.000000e+00> : vector<2x128xf32>
      %87 = tpu.matmul %84, %86, %cst_75 {dimension_numbers = #tpu.dot_dimension_numbers<[1], [0], [0], [1], [0, 0, 1, 1], [], []>} : vector<2x32xbf16>, vector<32x128xbf16>, vector<2x128xf32> -> vector<2x128xf32>
      %88 = arith.addf %81, %87 : vector<2x128xf32>
      %c0_76 = arith.constant 0 : index
      %c8 = arith.constant 8 : index
      %c0_77 = arith.constant 0 : index
      %89 = vector.load %arg9[%c0_76, %c8, %c0_77] : memref<2x16x32xf32, #tpu.memory_space<vmem>>, vector<2x1x32xf32>
      %90 = vector.shape_cast %89 : vector<2x1x32xf32> to vector<2x32xf32>
      %91 = arith.truncf %90 : vector<2x32xf32> to vector<2x32xbf16>
      %c8_78 = arith.constant 8 : index
      %c0_79 = arith.constant 0 : index
      %c0_80 = arith.constant 0 : index
      %92 = vector.load %arg6[%c8_78, %c0_79, %c0_80] : memref<16x32x128xbf16, #tpu.memory_space<vmem>>, vector<1x32x128xbf16>
      %93 = vector.shape_cast %92 : vector<1x32x128xbf16> to vector<32x128xbf16>
      %cst_81 = arith.constant dense<0.000000e+00> : vector<2x128xf32>
      %94 = tpu.matmul %91, %93, %cst_81 {dimension_numbers = #tpu.dot_dimension_numbers<[1], [0], [0], [1], [0, 0, 1, 1], [], []>} : vector<2x32xbf16>, vector<32x128xbf16>, vector<2x128xf32> -> vector<2x128xf32>
      %95 = arith.addf %88, %94 : vector<2x128xf32>
      %c0_82 = arith.constant 0 : index
      %c9 = arith.constant 9 : index
      %c0_83 = arith.constant 0 : index
      %96 = vector.load %arg9[%c0_82, %c9, %c0_83] : memref<2x16x32xf32, #tpu.memory_space<vmem>>, vector<2x1x32xf32>
      %97 = vector.shape_cast %96 : vector<2x1x32xf32> to vector<2x32xf32>
      %98 = arith.truncf %97 : vector<2x32xf32> to vector<2x32xbf16>
      %c9_84 = arith.constant 9 : index
      %c0_85 = arith.constant 0 : index
      %c0_86 = arith.constant 0 : index
      %99 = vector.load %arg6[%c9_84, %c0_85, %c0_86] : memref<16x32x128xbf16, #tpu.memory_space<vmem>>, vector<1x32x128xbf16>
      %100 = vector.shape_cast %99 : vector<1x32x128xbf16> to vector<32x128xbf16>
      %cst_87 = arith.constant dense<0.000000e+00> : vector<2x128xf32>
      %101 = tpu.matmul %98, %100, %cst_87 {dimension_numbers = #tpu.dot_dimension_numbers<[1], [0], [0], [1], [0, 0, 1, 1], [], []>} : vector<2x32xbf16>, vector<32x128xbf16>, vector<2x128xf32> -> vector<2x128xf32>
      %102 = arith.addf %95, %101 : vector<2x128xf32>
      %c0_88 = arith.constant 0 : index
      %c10 = arith.constant 10 : index
      %c0_89 = arith.constant 0 : index
      %103 = vector.load %arg9[%c0_88, %c10, %c0_89] : memref<2x16x32xf32, #tpu.memory_space<vmem>>, vector<2x1x32xf32>
      %104 = vector.shape_cast %103 : vector<2x1x32xf32> to vector<2x32xf32>
      %105 = arith.truncf %104 : vector<2x32xf32> to vector<2x32xbf16>
      %c10_90 = arith.constant 10 : index
      %c0_91 = arith.constant 0 : index
      %c0_92 = arith.constant 0 : index
      %106 = vector.load %arg6[%c10_90, %c0_91, %c0_92] : memref<16x32x128xbf16, #tpu.memory_space<vmem>>, vector<1x32x128xbf16>
      %107 = vector.shape_cast %106 : vector<1x32x128xbf16> to vector<32x128xbf16>
      %cst_93 = arith.constant dense<0.000000e+00> : vector<2x128xf32>
      %108 = tpu.matmul %105, %107, %cst_93 {dimension_numbers = #tpu.dot_dimension_numbers<[1], [0], [0], [1], [0, 0, 1, 1], [], []>} : vector<2x32xbf16>, vector<32x128xbf16>, vector<2x128xf32> -> vector<2x128xf32>
      %109 = arith.addf %102, %108 : vector<2x128xf32>
      %c0_94 = arith.constant 0 : index
      %c11 = arith.constant 11 : index
      %c0_95 = arith.constant 0 : index
      %110 = vector.load %arg9[%c0_94, %c11, %c0_95] : memref<2x16x32xf32, #tpu.memory_space<vmem>>, vector<2x1x32xf32>
      %111 = vector.shape_cast %110 : vector<2x1x32xf32> to vector<2x32xf32>
      %112 = arith.truncf %111 : vector<2x32xf32> to vector<2x32xbf16>
      %c11_96 = arith.constant 11 : index
      %c0_97 = arith.constant 0 : index
      %c0_98 = arith.constant 0 : index
      %113 = vector.load %arg6[%c11_96, %c0_97, %c0_98] : memref<16x32x128xbf16, #tpu.memory_space<vmem>>, vector<1x32x128xbf16>
      %114 = vector.shape_cast %113 : vector<1x32x128xbf16> to vector<32x128xbf16>
      %cst_99 = arith.constant dense<0.000000e+00> : vector<2x128xf32>
      %115 = tpu.matmul %112, %114, %cst_99 {dimension_numbers = #tpu.dot_dimension_numbers<[1], [0], [0], [1], [0, 0, 1, 1], [], []>} : vector<2x32xbf16>, vector<32x128xbf16>, vector<2x128xf32> -> vector<2x128xf32>
      %116 = arith.addf %109, %115 : vector<2x128xf32>
      %c0_100 = arith.constant 0 : index
      %c12 = arith.constant 12 : index
      %c0_101 = arith.constant 0 : index
      %117 = vector.load %arg9[%c0_100, %c12, %c0_101] : memref<2x16x32xf32, #tpu.memory_space<vmem>>, vector<2x1x32xf32>
      %118 = vector.shape_cast %117 : vector<2x1x32xf32> to vector<2x32xf32>
      %119 = arith.truncf %118 : vector<2x32xf32> to vector<2x32xbf16>
      %c12_102 = arith.constant 12 : index
      %c0_103 = arith.constant 0 : index
      %c0_104 = arith.constant 0 : index
      %120 = vector.load %arg6[%c12_102, %c0_103, %c0_104] : memref<16x32x128xbf16, #tpu.memory_space<vmem>>, vector<1x32x128xbf16>
      %121 = vector.shape_cast %120 : vector<1x32x128xbf16> to vector<32x128xbf16>
      %cst_105 = arith.constant dense<0.000000e+00> : vector<2x128xf32>
      %122 = tpu.matmul %119, %121, %cst_105 {dimension_numbers = #tpu.dot_dimension_numbers<[1], [0], [0], [1], [0, 0, 1, 1], [], []>} : vector<2x32xbf16>, vector<32x128xbf16>, vector<2x128xf32> -> vector<2x128xf32>
      %123 = arith.addf %116, %122 : vector<2x128xf32>
      %c0_106 = arith.constant 0 : index
      %c13 = arith.constant 13 : index
      %c0_107 = arith.constant 0 : index
      %124 = vector.load %arg9[%c0_106, %c13, %c0_107] : memref<2x16x32xf32, #tpu.memory_space<vmem>>, vector<2x1x32xf32>
      %125 = vector.shape_cast %124 : vector<2x1x32xf32> to vector<2x32xf32>
      %126 = arith.truncf %125 : vector<2x32xf32> to vector<2x32xbf16>
      %c13_108 = arith.constant 13 : index
      %c0_109 = arith.constant 0 : index
      %c0_110 = arith.constant 0 : index
      %127 = vector.load %arg6[%c13_108, %c0_109, %c0_110] : memref<16x32x128xbf16, #tpu.memory_space<vmem>>, vector<1x32x128xbf16>
      %128 = vector.shape_cast %127 : vector<1x32x128xbf16> to vector<32x128xbf16>
      %cst_111 = arith.constant dense<0.000000e+00> : vector<2x128xf32>
      %129 = tpu.matmul %126, %128, %cst_111 {dimension_numbers = #tpu.dot_dimension_numbers<[1], [0], [0], [1], [0, 0, 1, 1], [], []>} : vector<2x32xbf16>, vector<32x128xbf16>, vector<2x128xf32> -> vector<2x128xf32>
      %130 = arith.addf %123, %129 : vector<2x128xf32>
      %c0_112 = arith.constant 0 : index
      %c14 = arith.constant 14 : index
      %c0_113 = arith.constant 0 : index
      %131 = vector.load %arg9[%c0_112, %c14, %c0_113] : memref<2x16x32xf32, #tpu.memory_space<vmem>>, vector<2x1x32xf32>
      %132 = vector.shape_cast %131 : vector<2x1x32xf32> to vector<2x32xf32>
      %133 = arith.truncf %132 : vector<2x32xf32> to vector<2x32xbf16>
      %c14_114 = arith.constant 14 : index
      %c0_115 = arith.constant 0 : index
      %c0_116 = arith.constant 0 : index
      %134 = vector.load %arg6[%c14_114, %c0_115, %c0_116] : memref<16x32x128xbf16, #tpu.memory_space<vmem>>, vector<1x32x128xbf16>
      %135 = vector.shape_cast %134 : vector<1x32x128xbf16> to vector<32x128xbf16>
      %cst_117 = arith.constant dense<0.000000e+00> : vector<2x128xf32>
      %136 = tpu.matmul %133, %135, %cst_117 {dimension_numbers = #tpu.dot_dimension_numbers<[1], [0], [0], [1], [0, 0, 1, 1], [], []>} : vector<2x32xbf16>, vector<32x128xbf16>, vector<2x128xf32> -> vector<2x128xf32>
      %137 = arith.addf %130, %136 : vector<2x128xf32>
      %c0_118 = arith.constant 0 : index
      %c15 = arith.constant 15 : index
      %c0_119 = arith.constant 0 : index
      %138 = vector.load %arg9[%c0_118, %c15, %c0_119] : memref<2x16x32xf32, #tpu.memory_space<vmem>>, vector<2x1x32xf32>
      %139 = vector.shape_cast %138 : vector<2x1x32xf32> to vector<2x32xf32>
      %140 = arith.truncf %139 : vector<2x32xf32> to vector<2x32xbf16>
      %c15_120 = arith.constant 15 : index
      %c0_121 = arith.constant 0 : index
      %c0_122 = arith.constant 0 : index
      %141 = vector.load %arg6[%c15_120, %c0_121, %c0_122] : memref<16x32x128xbf16, #tpu.memory_space<vmem>>, vector<1x32x128xbf16>
      %142 = vector.shape_cast %141 : vector<1x32x128xbf16> to vector<32x128xbf16>
      %cst_123 = arith.constant dense<0.000000e+00> : vector<2x128xf32>
      %143 = tpu.matmul %140, %142, %cst_123 {dimension_numbers = #tpu.dot_dimension_numbers<[1], [0], [0], [1], [0, 0, 1, 1], [], []>} : vector<2x32xbf16>, vector<32x128xbf16>, vector<2x128xf32> -> vector<2x128xf32>
      %144 = arith.addf %137, %143 : vector<2x128xf32>
      %c0_124 = arith.constant 0 : index
      %c0_125 = arith.constant 0 : index
      %145 = vector.load %arg7[%c0_124, %c0_125] : memref<1x128xf32, #tpu.memory_space<vmem>>, vector<1x128xf32>
      %146 = vector.broadcast %145 : vector<1x128xf32> to vector<2x128xf32>
      %147 = arith.addf %144, %146 : vector<2x128xf32>
      %148 = arith.negf %147 : vector<2x128xf32>
      %149 = math.exp %148 : vector<2x128xf32>
      %cst_126 = arith.constant 1.000000e+00 : f32
      %150 = vector.broadcast %cst_126 : f32 to vector<2x128xf32>
      %151 = arith.addf %150, %149 : vector<2x128xf32>
      %152 = arith.divf %150, %151 : vector<2x128xf32>
      %c0_127 = arith.constant 0 : index
      %c0_128 = arith.constant 0 : index
      %153 = vector.load %arg8[%c0_127, %c0_128] : memref<2x128xf32, #tpu.memory_space<vmem>>, vector<2x128xf32>
      tpu.vector_store %arg8[%c0_127, %c0_128], %152 {strides = array<i32>} : memref<2x128xf32, #tpu.memory_space<vmem>>, vector<2x128xf32>,
    } else {
    }
    return
  }
  func.func @transform_0(%arg0: i32, %arg1: i32) -> (i32, i32, i32) {
    %c0_i32 = arith.constant 0 : i32
    %c0_i32_0 = arith.constant 0 : i32
    return %arg0, %arg1, %c0_i32 : i32, i32, i32
  }
  func.func @transform_1(%arg0: i32, %arg1: i32) -> (i32, i32) {
    %c0_i32 = arith.constant 0 : i32
    %c0_i32_0 = arith.constant 0 : i32
    %c0_i32_1 = arith.constant 0 : i32
    return %c0_i32, %c0_i32_0 : i32, i32
  }
  func.func @transform_2(%arg0: i32, %arg1: i32) -> (i32, i32) {
    %c0_i32 = arith.constant 0 : i32
    %c0_i32_0 = arith.constant 0 : i32
    %c0_i32_1 = arith.constant 0 : i32
    return %c0_i32, %c0_i32_0 : i32, i32
  }
  func.func @transform_3(%arg0: i32, %arg1: i32) -> (i32, i32) {
    %c0_i32 = arith.constant 0 : i32
    %c0_i32_0 = arith.constant 0 : i32
    return %c0_i32, %arg1 : i32, i32
  }
  func.func @transform_4(%arg0: i32, %arg1: i32) -> (i32, i32, i32) {
    %c0_i32 = arith.constant 0 : i32
    %c0_i32_0 = arith.constant 0 : i32
    %c0_i32_1 = arith.constant 0 : i32
    %c0_i32_2 = arith.constant 0 : i32
    return %c0_i32, %c0_i32_0, %c0_i32_1 : i32, i32, i32
  }
  func.func @transform_5(%arg0: i32, %arg1: i32) -> (i32, i32) {
    %c0_i32 = arith.constant 0 : i32
    %c0_i32_0 = arith.constant 0 : i32
    %c0_i32_1 = arith.constant 0 : i32
    return %c0_i32, %c0_i32_0 : i32, i32
  }
  func.func @transform_6(%arg0: i32, %arg1: i32) -> (i32, i32) {
    %c0_i32 = arith.constant 0 : i32
    %c0_i32_0 = arith.constant 0 : i32
    return %arg0, %c0_i32 : i32, i32
  }
}

</mosaic_0001>

<bundles_post_ra>
// kernel: forward.1
= control target key start
LH: loop header
LB: loop body
LE: loop exit
PB: predicated region body
PF: predicated region fallthrough
CT: control target
= control target key end

     0   :  { %11 = vsyncpa [#allocation4], 0  ;;  %s2569_s0 = inlined_call_operand.hbm [shape: bf16[2,64,32], index: 0, kind: input, shape index: {}]   ;;  %s2570_s1 = inlined_call_operand.hbm [shape: bf16[32,32], index: 1, kind: input, shape index: {}]   ;;  %s2571_s2 = inlined_call_operand.hbm [shape: f32[1,32], index: 2, kind: input, shape index: {}]   ;;  %s2572_s3 = inlined_call_operand.hbm [shape: f32[16,64], index: 3, kind: input, shape index: {}]   ;;  %s2573_s4 = inlined_call_operand.hbm [shape: bf16[16,32,128], index: 4, kind: input, shape index: {}]   ;;  %s2574_s5 = inlined_call_operand.hbm [shape: f32[1,128], index: 5, kind: input, shape index: {}]   ;;  %s2575_s6 = inlined_call_operand.hbm [shape: f32[2,128], index: 6, kind: output, shape index: {}]  }
   0x1   :  { %12 = vsyncpa [#allocation7], 0 }
   0x2   :  { %13 = vsyncpa [#allocation10], 0 }
   0x3   :  { %14 = vsyncpa [#allocation13], 0 }
   0x4   :  { %15 = vsyncpa [#allocation5], 0  ;;  %s2279_s21 = smov [#allocation6]   ;;  %s2280_s23 = smov [#allocation9]  }
   0x5   :  { %s33_s22 = sshll.u32 %s2279_s21, 4  ;;  %s55_s24 = sshll.u32 %s2280_s23, 4  ;;  %s34_s22 = int_to_ptr.vmem [resolvable:$true] %s33_s22  ;;  %s2327_s24 = int_to_ptr.vmem [resolvable:$true] %s55_s24 }
   0x6   :  { %s2115_s27 = scalar_lea.hbm %s2570_s1, 256 }
   0x7   :  { %p2116_p0 = scmp.ne.s32.totalorder %s2570_s1, %s2115_s27  ;;  %p2119_p1 = scmp.lt.u32.totalorder %s2115_s27, %s2570_s1 }
   0x9   :  { %p2121_p2 = pnand %p2119_p1, %p2116_p0 }
   0xb   :  { %2124 = shalt.err (!%p2121_p2)
}
   0xc   :  { %s2125_s8 = scalar_lea.vmem %s34_s22, 256  ;;  %p2130_p4 = scmp.lt.s32.totalorder %s34_s22, %s34_s22 }
   0xd   :  { %p2126_p3 = scmp.ne.s32.totalorder %s34_s22, %s2125_s8  ;;  %p2131_p5 = scmp.lt.s32.totalorder %s2125_s8, %s2125_s8 }
   0xf   :  { %p2132_p6 = por %p2131_p5, %p2130_p4 }
  0x11   :  { %p2133_p7 = pnand %p2132_p6, %p2126_p3 }
  0x13   :  { %2136 = shalt.err (!%p2133_p7)
}
  0x14   :  { %s2281_s9 = smov 64   ;;  %s2282_s10 = smov 4  }
  0x15   :  { %39 = dma.hbm_to_vmem [thread:$0]  %s2570_s1, 256, %s34_s22, [#allocation7], %s2281_s9, %s2281_s9, %s2282_s10  }
  0x16   :  { %s2137_s15 = scalar_lea.hbm %s2572_s3, 256 }
  0x17   :  { %p2138_p8 = scmp.ne.s32.totalorder %s2572_s3, %s2137_s15  ;;  %p2141_p9 = scmp.lt.u32.totalorder %s2137_s15, %s2572_s3 }
  0x19   :  { %p2143_p10 = pnand %p2141_p9, %p2138_p8 }
  0x1b   :  { %2146 = shalt.err (!%p2143_p10)
}
  0x1c   :  { %s2147_s20 = scalar_lea.vmem %s2327_s24, 256  ;;  %p2152_p12 = scmp.lt.s32.totalorder %s2327_s24, %s2327_s24 }
  0x1d   :  { %p2148_p11 = scmp.ne.s32.totalorder %s2327_s24, %s2147_s20  ;;  %p2153_p13 = scmp.lt.s32.totalorder %s2147_s20, %s2147_s20 }
  0x1f   :  { %p2154_p0 = por %p2153_p13, %p2152_p12 }
  0x21   :  { %p2155_p1 = pnand %p2154_p0, %p2148_p11 }
  0x23   :  { %2158 = shalt.err (!%p2155_p1)
}
  0x24   :  { %s2283_s1 = smov 128   ;;  %s2284_s21 = smov 8  }
  0x25   :  { %61 = dma.hbm_to_vmem [thread:$0]  %s2572_s3, 256, %s2327_s24, [#allocation10], %s2283_s1, %s2283_s1, %s2284_s21  }
  0x26   :  { %s2285_s25 = smov [#allocation3]   ;;  %s2286_s27 = smov [#allocation8]  }
  0x27   :  { %s21_s26 = sshll.u32 %s2285_s25, 4  ;;  %s46_s28 = sshll.u32 %s2286_s27, 4  ;;  %s22_s26 = int_to_ptr.vmem [resolvable:$true] %s21_s26  ;;  %s47_s28 = int_to_ptr.vmem [resolvable:$true] %s46_s28 }
  0x28   :  { %s2159_s7 = scalar_lea.hbm %s2569_s0, 1024 }
  0x29   :  { %p2160_p2 = scmp.ne.s32.totalorder %s2569_s0, %s2159_s7  ;;  %p2163_p3 = scmp.lt.u32.totalorder %s2159_s7, %s2569_s0 }
  0x2b   :  { %p2165_p4 = pnand %p2163_p3, %p2160_p2 }
  0x2d   :  { %2168 = shalt.err (!%p2165_p4)
}
  0x2e   :  { %s2169_s3 = scalar_lea.vmem %s22_s26, 1024  ;;  %p2174_p6 = scmp.lt.s32.totalorder %s22_s26, %s22_s26 }
  0x2f   :  { %p2170_p5 = scmp.ne.s32.totalorder %s22_s26, %s2169_s3  ;;  %p2175_p7 = scmp.lt.s32.totalorder %s2169_s3, %s2169_s3 }
  0x31   :  { %p2176_p8 = por %p2175_p7, %p2174_p6 }
  0x33   :  { %p2177_p9 = pnand %p2176_p8, %p2170_p5 }
  0x35   :  { %2180 = shalt.err (!%p2177_p9)
}
  0x36   :  { %27 = dma.hbm_to_vmem [thread:$0]  %s2569_s0, 1024, %s22_s26, [#allocation4], %s2281_s9, %s2281_s9, %s2282_s10  }
  0x37   :  { %s2181_s17 = scalar_lea.hbm %s2571_s2, 16 }
  0x38   :  { %p2182_p10 = scmp.ne.s32.totalorder %s2571_s2, %s2181_s17  ;;  %p2185_p11 = scmp.lt.u32.totalorder %s2181_s17, %s2571_s2 }
  0x3a   :  { %p2187_p12 = pnand %p2185_p11, %p2182_p10 }
  0x3c   :  { %2190 = shalt.err (!%p2187_p12)
}
  0x3d   :  { %s2191_s21 = scalar_lea.vmem %s47_s28, 16  ;;  %s2195_s22 = scalar_lea.vmem %s47_s28, 32 }
  0x3e   :  { %p2192_p13 = scmp.ne.s32.totalorder %s47_s28, %s2191_s21  ;;  %p2196_p0 = scmp.lt.s32.totalorder %s47_s28, %s47_s28 }
  0x3f   :  { %p2197_p1 = scmp.lt.s32.totalorder %s2195_s22, %s2191_s21 }
  0x41   :  { %p2198_p2 = por %p2197_p1, %p2196_p0 }
  0x43   :  { %p2199_p3 = pnand %p2198_p2, %p2192_p13 }
  0x45   :  { %2202 = shalt.err (!%p2199_p3)
}
  0x46   :  { %49 = dma.hbm_to_vmem [thread:$0]  %s2571_s2, 16, %s47_s28, [#allocation7]  }
  0x47   :  { %s2287_s25 = smov [#allocation11]   ;;  %s2288_s27 = smov [#allocation12]  }
  0x48   :  { %s67_s26 = sshll.u32 %s2287_s25, 4  ;;  %s80_s29 = sshll.u32 %s2288_s27, 4  ;;  %s68_s26 = int_to_ptr.vmem [resolvable:$true] %s67_s26  ;;  %s81_s29 = int_to_ptr.vmem [resolvable:$true] %s80_s29 }
  0x49   :  { %s2203_s8 = scalar_lea.hbm %s2573_s4, 4096 }
  0x4a   :  { %p2204_p4 = scmp.ne.s32.totalorder %s2573_s4, %s2203_s8  ;;  %p2207_p5 = scmp.lt.u32.totalorder %s2203_s8, %s2573_s4 }
  0x4c   :  { %p2209_p6 = pnand %p2207_p5, %p2204_p4 }
  0x4e   :  { %2212 = shalt.err (!%p2209_p6)
}
  0x4f   :  { %s2213_s2 = scalar_lea.vmem %s68_s26, 4096  ;;  %p2218_p8 = scmp.lt.s32.totalorder %s68_s26, %s68_s26 }
  0x50   :  { %p2214_p7 = scmp.ne.s32.totalorder %s68_s26, %s2213_s2  ;;  %p2219_p9 = scmp.lt.s32.totalorder %s2213_s2, %s2213_s2 }
  0x52   :  { %p2220_p10 = por %p2219_p9, %p2218_p8 }
  0x54   :  { %p2221_p11 = pnand %p2220_p10, %p2214_p7 }
  0x56   :  { %2224 = shalt.err (!%p2221_p11)
}
  0x57   :  { %73 = dma.hbm_to_vmem [thread:$0]  %s2573_s4, 4096, %s68_s26, [#allocation10], %s2281_s9, %s2281_s9, %s2282_s10  }
  0x58   :  { %s2225_s16 = scalar_lea.hbm %s2574_s5, 16 }
  0x59   :  { %p2226_p12 = scmp.ne.s32.totalorder %s2574_s5, %s2225_s16  ;;  %p2229_p13 = scmp.lt.u32.totalorder %s2225_s16, %s2574_s5 }
  0x5b   :  { %p2231_p0 = pnand %p2229_p13, %p2226_p12 }
  0x5d   :  { %2234 = shalt.err (!%p2231_p0)
}
  0x5e   :  { %s2235_s1 = scalar_lea.vmem %s81_s29, 16  ;;  %s2239_s21 = scalar_lea.vmem %s81_s29, 32 }
  0x5f   :  { %p2236_p1 = scmp.ne.s32.totalorder %s81_s29, %s2235_s1  ;;  %p2240_p2 = scmp.lt.s32.totalorder %s81_s29, %s81_s29 }
  0x60   :  { %p2241_p3 = scmp.lt.s32.totalorder %s2239_s21, %s2235_s1 }
  0x62   :  { %p2242_p4 = por %p2241_p3, %p2240_p2 }
  0x64   :  { %p2243_p5 = pnand %p2242_p4, %p2236_p1 }
  0x66   :  { %2246 = shalt.err (!%p2243_p5)
}
  0x67   :  { %83 = dma.hbm_to_vmem [thread:$0]  %s2574_s5, 16, %s81_s29, [#allocation13]  }
  0x68   :  { %2269 = dma.done.wait [#allocation4], 1024  }
  0x69   :  { %2270 = vsyncadd [#allocation4], 4294966272 }
  0x6a   :  { %2271 = dma.done.wait [#allocation7], 272  }
  0x6b   :  { %2272 = vsyncadd [#allocation7], 4294967024 }
  0x6c   :  { %2273 = dma.done.wait [#allocation10], 4352  }
  0x6d   :  { %2274 = vsyncadd [#allocation10], 4294962944 }
  0x6e   :  { %2275 = dma.done.wait [#allocation13], 16  }
  0x6f   :  { %2276 = vsyncadd [#allocation13], 4294967280  ;;  %v2069_v0 = vld [vmem:[#allocation6] sm:$0xff]   ;;  %v2070_v1 = vld [vmem:[#allocation6 + $0x8] sm:$0xff]   ;;  %vm107_vm0 = vcmask 261120   ;;  %vm333_vm1 = vcmask 523264  }
  0x70   :  { %1838 = vmatprep.subr.bf16.mxu0 %v2069_v0  ;;  %v2071_v2 = vld [vmem:[#allocation3] sm:$0xff]   ;;  %v2072_v3 = vld [vmem:[#allocation3 + $0x8] sm:$0xff]   ;;  %v2073_v4 = vld [vmem:[#allocation3 + $0x10] sm:$0xff]   ;;  %v2289_v11 = vmov 0.0   ;;  %vm2290_vm2 = vmmov 0   ;;  %vm526_vm3 = vcmask 1041409  }
  0x71   :  { %1839 = vmatpush3.bf16.msra.mxu0 %v2069_v0  ;;  %1842 = vmatprep.mubr.msk.bf16.mxu0 %vm107_vm0, %v2071_v2  ;;  %v2074_v5 = vld [vmem:[#allocation3 + $0x18] sm:$0xff]   ;;  %v2075_v6 = vld [vmem:[#allocation3 + $0x20] sm:$0xff]   ;;  %v2076_v7 = vld [vmem:[#allocation3 + $0x28] sm:$0xff]   ;;  %109 = vst.msk [vmem:[#allocation2 + $0x8] sm:$0xff] %vm107_vm0, %v2289_v11  ;;  %s2291_s5 = smov [#allocation14]  }
  0x72   :  { %1840 = vmatprep.subr.bf16.mxu0 %v2070_v1  ;;  %v2077_v8 = vld [vmem:[#allocation3 + $0x30] sm:$0xff]   ;;  %v2078_v9 = vld [vmem:[#allocation3 + $0x38] sm:$0xff]   ;;  %108 = vst.msk [vmem:[#allocation2] sm:$0xff] %vm107_vm0, %v2289_v11  ;;  %110 = vst.msk [vmem:[#allocation2 + $0x10] sm:$0xff] %vm107_vm0, %v2289_v11  ;;  %s1675_s10 = sshll.u32 %s2291_s5, 4  ;;  %s1676_s10 = int_to_ptr.vmem [resolvable:$true] %s1675_s10 }
  0x73   :  { %v2423_v10 = vld [vmem:[#allocation9] sm:$0xff]  ;;  %111 = vst.msk [vmem:[#allocation2 + $0x18] sm:$0xff] %vm107_vm0, %v2289_v11  ;;  %v2436_v12 = vld [vmem:[#allocation8] ss:$0 sm:$0xff]  ;;  %v330_v54 = vld [vmem:[#allocation9 + $0x8] sm:$0xff]  ;;  %s2247_s22 = scalar_lea.vmem %s1676_s10, 32  ;;  %p2252_p7 = scmp.lt.s32.totalorder %s1676_s10, %s1676_s10 }
  0x74   :  { %1874 = vmatprep.mubr.msk.f32.mxu1 %vm333_vm1, %v2423_v10  ;;  %p2248_p6 = scmp.ne.s32.totalorder %s1676_s10, %s2247_s22  ;;  %p2253_p8 = scmp.lt.s32.totalorder %s2247_s22, %s2247_s22 }
  0x75   :  { %1841 = vmatpush3.bf16.msra.mxu0 %v2070_v1 }
  0x76   :  { %1896 = vmatprep.subr.bf16.mxu0 %v2289_v11  ;;  %p2254_p9 = por %p2253_p8, %p2252_p7 }
  0x78   :  { %1843 = vmatmul.mubr.msk.bf16.vlgmr.msra.gmra.mrb[0].mxu0 %vm107_vm0, %v2072_v3  ;;  %p2255_p10 = pnand %p2254_p9, %p2248_p6 }
  0x79   :  { %1846 = vmatprep.mubr.msk.bf16.mxu0 %vm107_vm0, %v2073_v4 }
  0x80   :  { %1847 = vmatmul.mubr.msk.bf16.gmra.mrb[4].mxu0 %vm107_vm0, %v2074_v5 }
  0x81   :  { %1850 = vmatprep.mubr.msk.bf16.mxu0 %vm107_vm0, %v2075_v6  ;;  %v2079_v6 = vld [vmem:[#allocation11 + $0x10] sm:$0xff]  }
  0x82   :  { %1897 = vmatpush3.bf16.msra.mxu0 %v2079_v6 }
  0x83   :  { %1898 = vmatprep.subr.bf16.mxu0 %v2289_v11 }
  0x88   :  { %1851 = vmatmul.mubr.msk.bf16.gmra.mrb[8].mxu0 %vm107_vm0, %v2076_v7  ;;  %v2080_v7 = vld [vmem:[#allocation11 + $0x18] sm:$0xff]  }
  0x89   :  { %1854 = vmatprep.mubr.msk.bf16.mxu0 %vm107_vm0, %v2077_v8  ;;  %v2081_v8 = vld [vmem:[#allocation11] sm:$0xff]   ;;  %1899 = vmatpush3.bf16.msra.mxu0 %v2080_v7 }
  0x8a   :  { %1912 = vmatprep.subr.bf16.mxu0 %v2289_v11  ;;  %v2087_v7 = vld [vmem:[#allocation11 + $0x40] sm:$0xff]  }
  0x90   :  { %1855 = vmatmul.mubr.msk.bf16.gmra.mrb[12].mxu0 %vm107_vm0, %v2078_v9  ;;  %v2082_v9 = vld [vmem:[#allocation11 + $0x8] sm:$0xff]  }
  0x91   :  { %1900 = vmatprep.mubr.msk.bf16.mxu0 %vm2290_vm2, %v2289_v11 }
 0x14b   :  { %v1844_v13 = vpop.f32.mrb[0].mxu0 }
 0x14c   :  { %v259_v14 = vadd.f32 %v1844_v13, %v2436_v12  ;;  %v250_v15 = vpop.f32.mrb[1].mxu0 }
 0x14d   :  { %v251_v16 = vadd.f32 %v2436_v12, %v250_v15  ;;  %v1845_v17 = vpop.f32.mrb[2].mxu0 }
 0x14e   :  { %v262_v18 = vadd.f32 %v1845_v17, %v2436_v12  ;;  %v253_v19 = vpop.f32.mrb[3].mxu0  ;;  %v315_v21 = vmax.f32 %v259_v14, 0.0  ;;  %v421_v17 = vld [vmem:[#allocation2 + $0x18] sm:$0xff] }
 0x14f   :  { %v254_v20 = vadd.f32 %v2436_v12, %v253_v19  ;;  %v313_v23 = vmax.f32 %v251_v16, 0.0 }
 0x150   :  { %v316_v22 = vmax.f32 %v262_v18, 0.0  ;;  %v420_v18 = vld [vmem:[#allocation2 + $0x10] sm:$0xff] }
 0x151   :  { %v314_v24 = vmax.f32 %v254_v20, 0.0 }
 0x152   :  { %v2028_v25 = vpack.c.bf16 %v316_v22, %v315_v21 }
 0x153   :  { %v1848_v26 = vpop.f32.mrb[4].mxu0  ;;  %v2024_v27 = vpack.c.bf16 %v314_v24, %v313_v23 }
 0x154   :  { %v275_v28 = vadd.f32 %v1848_v26, %v2436_v12  ;;  %v266_v29 = vpop.f32.mrb[5].mxu0 }
 0x155   :  { %v267_v30 = vadd.f32 %v2436_v12, %v266_v29  ;;  %v1849_v31 = vpop.f32.mrb[6].mxu0  ;;  %2025 = vmatprep.subr.bf16.mxu1 %v2024_v27 }
 0x156   :  { %v278_v32 = vadd.f32 %v1849_v31, %v2436_v12  ;;  %v269_v33 = vpop.f32.mrb[7].mxu0  ;;  %2027 = vmatpush3.bf16.msra.mxu1 %v2024_v27  ;;  %v319_v35 = vmax.f32 %v275_v28, 0.0 }
 0x157   :  { %v270_v34 = vadd.f32 %v2436_v12, %v269_v33  ;;  %2029 = vmatprep.subr.bf16.mxu1 %v2028_v25  ;;  %v317_v37 = vmax.f32 %v267_v30, 0.0 }
 0x158   :  { %v320_v36 = vmax.f32 %v278_v32, 0.0 }
 0x159   :  { %v318_v38 = vmax.f32 %v270_v34, 0.0 }
 0x15a   :  { %v2036_v39 = vpack.c.bf16 %v320_v36, %v319_v35  ;;  %2031 = vmatpush3.bf16.msra.mxu1 %v2028_v25 }
 0x15b   :  { %v2032_v40 = vpack.c.bf16 %v318_v38, %v317_v37  ;;  %v1852_v41 = vpop.f32.mrb[8].mxu0 }
 0x15c   :  { %v291_v42 = vadd.f32 %v1852_v41, %v2436_v12  ;;  %v282_v43 = vpop.f32.mrb[9].mxu0 }
 0x15d   :  { %v283_v44 = vadd.f32 %v2436_v12, %v282_v43  ;;  %v1853_v45 = vpop.f32.mrb[10].mxu0  ;;  %2033 = vmatprep.subr.bf16.mxu1 %v2032_v40 }
 0x15e   :  { %v294_v46 = vadd.f32 %v1853_v45, %v2436_v12  ;;  %v285_v47 = vpop.f32.mrb[11].mxu0  ;;  %2035 = vmatpush3.bf16.msra.mxu1 %v2032_v40  ;;  %v323_v49 = vmax.f32 %v291_v42, 0.0 }
 0x15f   :  { %v286_v48 = vadd.f32 %v2436_v12, %v285_v47  ;;  %2037 = vmatprep.subr.bf16.mxu1 %v2036_v39  ;;  %v321_v51 = vmax.f32 %v283_v44, 0.0 }
 0x160   :  { %v324_v50 = vmax.f32 %v294_v46, 0.0 }
 0x161   :  { %v322_v52 = vmax.f32 %v286_v48, 0.0 }
 0x162   :  { %v2044_v53 = vpack.c.bf16 %v324_v50, %v323_v49  ;;  %2039 = vmatpush3.bf16.msra.mxu1 %v2036_v39  ;;  %v2083_v49 = vld [vmem:[#allocation11 + $0x20] sm:$0xff]   ;;  %v2084_v50 = vld [vmem:[#allocation11 + $0x30] sm:$0xff]  }
 0x163   :  { %v2040_v55 = vpack.c.bf16 %v322_v52, %v321_v51  ;;  %v1856_v56 = vpop.f32.mrb[12].mxu0 }
 0x164   :  { %v307_v57 = vadd.f32 %v1856_v56, %v2436_v12  ;;  %v298_v58 = vpop.f32.mrb[13].mxu0 }
 0x165   :  { %v299_v59 = vadd.f32 %v2436_v12, %v298_v58  ;;  %v1857_v60 = vpop.f32.mrb[14].mxu0  ;;  %1875 = vmatmul.mubr.msk.f32.vlgmr.msra.gmra.mrb[0].mxu1 %vm333_vm1, %v330_v54  ;;  %2041 = vmatprep.subr.bf16.mxu1 %v2040_v55 }
 0x166   :  { %v310_v61 = vadd.f32 %v1857_v60, %v2436_v12  ;;  %v301_v62 = vpop.f32.mrb[15].mxu0  ;;  %2043 = vmatpush3.bf16.msra.mxu1 %v2040_v55  ;;  %1893 = vmatprep.mubr.msk.f32.mxu1 %vm333_vm1, %v2423_v10  ;;  %v327_v0 = vmax.f32 %v307_v57, 0.0  ;;  %v332_v10 = vld [vmem:[#allocation2 + $0x8] sm:$0xff]  ;;  %v2086_v60 = vld [vmem:[#allocation11 + $0x38] sm:$0xff]  }
 0x167   :  { %v302_v63 = vadd.f32 %v2436_v12, %v301_v62  ;;  %2045 = vmatprep.subr.bf16.mxu1 %v2044_v53  ;;  %v325_v2 = vmax.f32 %v299_v59, 0.0  ;;  %v331_v12 = vld [vmem:[#allocation2] sm:$0xff]  ;;  %v2085_v59 = vld [vmem:[#allocation11 + $0x28] sm:$0xff]  }
 0x168   :  { %v328_v1 = vmax.f32 %v310_v61, 0.0 }
 0x169   :  { %v326_v3 = vmax.f32 %v302_v63, 0.0 }
 0x16a   :  { %v2052_v4 = vpack.c.bf16 %v328_v1, %v327_v0  ;;  %2047 = vmatpush3.bf16.msra.mxu1 %v2044_v53 }
 0x16b   :  { %v2048_v5 = vpack.c.bf16 %v326_v3, %v325_v2 }
 0x16d   :  { %2049 = vmatprep.subr.bf16.mxu1 %v2048_v5 }
 0x16e   :  { %2051 = vmatpush3.bf16.msra.mxu1 %v2048_v5 }
 0x16f   :  { %2053 = vmatprep.subr.bf16.mxu1 %v2052_v4 }
 0x172   :  { %2055 = vmatpush3.bf16.msra.mxu1 %v2052_v4 }
 0x173   :  { %1904 = vmatprep.subr.bf16.mxu1 %v2289_v11 }
 0x175   :  { %1894 = vmatmul.mubr.msk.f32.vlgmr.msra.gmra.mrb[2].mxu1 %vm333_vm1, %v330_v54 }
 0x176   :  { %1908 = vmatprep.mubr.msk.bf16.mxu1 %vm2290_vm2, %v2289_v11  ;;  %1905 = vmatpush3.bf16.msra.mxu1 %v2081_v8  ;;  %v2088_v8 = vld [vmem:[#allocation11 + $0x50] sm:$0xff]  }
 0x177   :  { %1906 = vmatprep.subr.bf16.mxu1 %v2289_v11 }
 0x17a   :  { %1907 = vmatpush3.bf16.msra.mxu1 %v2082_v9 }
 0x17b   :  { %1920 = vmatprep.subr.bf16.mxu1 %v2289_v11 }
 0x238   :  { %v1876_v13 = vpop.f32.mrb[0].mxu1 }
 0x239   :  { %v416_v14 = vadd.f32 %v1876_v13, %v332_v10  ;;  %v406_v15 = vpop.f32.mrb[1].mxu1 }
 0x23a   :  { %v415_v16 = vadd.f32 %v406_v15, %v331_v12 }
 0x23b   :  { %418 = vst.msk [vmem:[#allocation2 + $0x8] sm:$0xff] %vm107_vm0, %v416_v14 }
 0x23c   :  { %417 = vst.msk [vmem:[#allocation2] sm:$0xff] %vm107_vm0, %v415_v16 }
 0x243   :  { %v512_v23 = vld [vmem:[#allocation2 + $0x1] sm:$0x1]  ;;  %v504_v24 = vld [vmem:[#allocation2] sm:$0x1]  ;;  %v646_v39 = vld [vmem:[#allocation2 + $0x2] sm:$0x1] }
 0x244   :  { %v514_v26 = vpack.c.bf16 %v512_v23, %v512_v23  ;;  %v506_v28 = vpack.c.bf16 %v504_v24, %v504_v24  ;;  %v718_v40 = vld [vmem:[#allocation2 + $0x3] sm:$0x1]  ;;  %v648_v51 = vpack.c.bf16 %v646_v39, %v646_v39  ;;  %v790_v63 = vld [vmem:[#allocation2 + $0x4] sm:$0x1]  ;;  %v862_v0 = vld [vmem:[#allocation2 + $0x5] sm:$0x1] }
 0x245   :  { %v720_v52 = vpack.c.bf16 %v718_v40, %v718_v40  ;;  %v792_v9 = vpack.c.bf16 %v790_v63, %v790_v63  ;;  %v864_v10 = vpack.c.bf16 %v862_v0, %v862_v0  ;;  %v1006_v23 = vld [vmem:[#allocation2 + $0x7] sm:$0x1]  ;;  %v2093_v40 = vld [vmem:[#allocation11 + $0x68] sm:$0xff]   ;;  %v2098_v63 = vld [vmem:[#allocation11 + $0x98] sm:$0xff]  }
 0x246   :  { %v523_v37 = vunpack.c.l.b16 %v514_v26  ;;  %v586_v38 = vunpack.c.l.b16 %v506_v28  ;;  %v657_v61 = vunpack.c.l.b16 %v648_v51 }
 0x247   :  { %v729_v62 = vunpack.c.l.b16 %v720_v52  ;;  %v2095_v52 = vld [vmem:[#allocation11 + $0x80] sm:$0xff]  }
 0x248   :  { %v1895_v19 = vpop.f32.mrb[2].mxu1 }
 0x249   :  { %v498_v20 = vadd.f32 %v1895_v19, %v421_v17  ;;  %v488_v21 = vpop.f32.mrb[3].mxu1  ;;  %v2090_v19 = vld [vmem:[#allocation11 + $0x58] sm:$0xff]  }
 0x24a   :  { %v497_v22 = vadd.f32 %v488_v21, %v420_v18  ;;  %v2089_v18 = vld [vmem:[#allocation11 + $0x48] sm:$0xff]   ;;  %v873_v21 = vunpack.c.l.b16 %v864_v10  ;;  %v2099_v10 = vld [vmem:[#allocation11 + $0xa0] sm:$0xff]  }
 0x24b   :  { %500 = vst.msk [vmem:[#allocation2 + $0x18] sm:$0xff] %vm107_vm0, %v498_v20  ;;  %v801_v20 = vunpack.c.l.b16 %v792_v9 }
 0x24c   :  { %499 = vst.msk [vmem:[#allocation2 + $0x10] sm:$0xff] %vm107_vm0, %v497_v22  ;;  %v934_v22 = vld [vmem:[#allocation2 + $0x6] sm:$0x1] }
 0x252   :  { %v1079_v28 = vld [vmem:[#allocation2 + $0x18] sm:$0x1]  ;;  %v1295_v51 = vld [vmem:[#allocation2 + $0x1b] sm:$0x1]  ;;  %v1439_v9 = vld [vmem:[#allocation2 + $0x1d] sm:$0x1] }
 0x253   :  { %v513_v25 = vld [vmem:[#allocation2 + $0x11] sm:$0x1]  ;;  %v505_v27 = vld [vmem:[#allocation2 + $0x10] sm:$0x1]  ;;  %v647_v29 = vld [vmem:[#allocation2 + $0x12] sm:$0x1] }
 0x254   :  { %v515_v30 = vpack.c.bf16 %v513_v25, %v513_v25  ;;  %v507_v31 = vpack.c.bf16 %v505_v27, %v505_v27  ;;  %v649_v32 = vpack.c.bf16 %v647_v29, %v647_v29  ;;  %v719_v33 = vld [vmem:[#allocation2 + $0x13] sm:$0x1]  ;;  %v791_v45 = vld [vmem:[#allocation2 + $0x14] sm:$0x1]  ;;  %v863_v46 = vld [vmem:[#allocation2 + $0x15] sm:$0x1] }
 0x255   :  { %v721_v34 = vpack.c.bf16 %v719_v33, %v719_v33  ;;  %v793_v57 = vpack.c.bf16 %v791_v45, %v791_v45  ;;  %v865_v58 = vpack.c.bf16 %v863_v46, %v863_v46  ;;  %v935_v5 = vld [vmem:[#allocation2 + $0x16] sm:$0x1]  ;;  %v1007_v6 = vld [vmem:[#allocation2 + $0x17] sm:$0x1]  ;;  %v1151_v29 = vld [vmem:[#allocation2 + $0x19] sm:$0x1]  ;;  %v1008_v33 = vpack.c.bf16 %v1006_v23, %v1006_v23 }
 0x256   :  { %v524_v35 = vunpack.c.l.b16 %v515_v30  ;;  %v587_v36 = vunpack.c.l.b16 %v507_v31  ;;  %v658_v43 = vunpack.c.l.b16 %v649_v32  ;;  %v937_v16 = vpack.c.bf16 %v935_v5, %v935_v5  ;;  %v2091_v30 = vld [vmem:[#allocation11 + $0x60] sm:$0xff]   ;;  %v2092_v31 = vld [vmem:[#allocation11 + $0x70] sm:$0xff]  }
 0x257   :  { %v730_v44 = vunpack.c.l.b16 %v721_v34  ;;  %v802_v3 = vunpack.c.l.b16 %v793_v57  ;;  %v874_v4 = vunpack.c.l.b16 %v865_v58  ;;  %v1009_v17 = vpack.c.bf16 %v1007_v6, %v1007_v6  ;;  %v1150_v45 = vld [vmem:[#allocation2 + $0x9] sm:$0x1] }
 0x258   :  { %v525_v41 = vrot.slane %v524_v35, 7  ;;  %v588_v42 = vrot.slane %v587_v36, 7  ;;  %v659_v55 = vrot.slane %v658_v43, 7  ;;  %v946_v26 = vunpack.c.l.b16 %v937_v16 }
 0x259   :  { %v731_v56 = vrot.slane %v730_v44, 7  ;;  %v803_v14 = vrot.slane %v802_v3, 7  ;;  %v875_v15 = vrot.slane %v874_v4, 7  ;;  %v1018_v27 = vunpack.c.l.b16 %v1009_v17  ;;  %v1078_v44 = vld [vmem:[#allocation2 + $0x8] sm:$0x1] }
 0x25a   :  { %v527_v47 = vsel %vm526_vm3, %v525_v41, %v523_v37  ;;  %v589_v48 = vsel %vm526_vm3, %v588_v42, %v586_v38  ;;  %v660_v1 = vsel %vm526_vm3, %v659_v55, %v657_v61  ;;  %v936_v32 = vpack.c.bf16 %v934_v22, %v934_v22  ;;  %v2094_v41 = vld [vmem:[#allocation11 + $0x78] sm:$0xff]   ;;  %v1294_v3 = vld [vmem:[#allocation2 + $0xb] sm:$0x1] }
 0x25b   :  { %v528_v53 = vpack.c.b16 %v527_v47, %v527_v47  ;;  %v590_v54 = vpack.c.b16 %v589_v48, %v589_v48  ;;  %v732_v2 = vsel %vm526_vm3, %v731_v56, %v729_v62  ;;  %v661_v12 = vpack.c.b16 %v660_v1, %v660_v1  ;;  %v2097_v62 = vld [vmem:[#allocation11 + $0x88] sm:$0xff]   ;;  %v2102_v22 = vld [vmem:[#allocation11 + $0xb8] sm:$0xff]  }
 0x25c   :  { %v733_v13 = vpack.c.b16 %v732_v2, %v732_v2  ;;  %v804_v24 = vsel %vm526_vm3, %v803_v14, %v801_v20  ;;  %v876_v25 = vsel %vm526_vm3, %v875_v15, %v873_v21  ;;  %v947_v36 = vrot.slane %v946_v26, 7  ;;  %v1222_v2 = vld [vmem:[#allocation2 + $0xa] sm:$0x1]  ;;  %v1438_v26 = vld [vmem:[#allocation2 + $0xd] sm:$0x1] }
 0x25d   :  { %1901 = vmatmul.mubr.msk.bf16.vlgmr.msra.gmra.mrb[16].mxu0 %vm107_vm0, %v528_v53  ;;  %1909 = vmatmul.mubr.msk.bf16.vlgmr.msra.gmra.mrb[4].mxu1 %vm107_vm0, %v590_v54  ;;  %v805_v34 = vpack.c.b16 %v804_v24, %v804_v24  ;;  %v877_v35 = vpack.c.b16 %v876_v25, %v876_v25  ;;  %v1019_v37 = vrot.slane %v1018_v27, 7  ;;  %v1081_v38 = vpack.c.bf16 %v1079_v28, %v1079_v28  ;;  %v2096_v53 = vld [vmem:[#allocation11 + $0x90] sm:$0xff]   ;;  %v2101_v21 = vld [vmem:[#allocation11 + $0xa8] sm:$0xff]  }
 0x25e   :  { %1913 = vmatpush3.bf16.msra.mxu0 %v2083_v49  ;;  %1921 = vmatpush3.bf16.msra.mxu1 %v2084_v50  ;;  %v1153_v39 = vpack.c.bf16 %v1151_v29, %v1151_v29  ;;  %v945_v42 = vunpack.c.l.b16 %v936_v32  ;;  %v1017_v43 = vunpack.c.l.b16 %v1008_v33  ;;  %v1223_v50 = vld [vmem:[#allocation2 + $0x1a] sm:$0x1]  ;;  %v1080_v54 = vpack.c.bf16 %v1078_v44, %v1078_v44  ;;  %v1366_v25 = vld [vmem:[#allocation2 + $0xc] sm:$0x1]  ;;  %v1583_v32 = vld [vmem:[#allocation2 + $0x1f] sm:$0x1] }
 0x25f   :  { %1914 = vmatprep.subr.bf16.mxu0 %v2289_v11  ;;  %1922 = vmatprep.subr.bf16.mxu1 %v2289_v11  ;;  %v1090_v48 = vunpack.c.l.b16 %v1081_v38  ;;  %v1152_v55 = vpack.c.bf16 %v1150_v45, %v1150_v45  ;;  %v1297_v61 = vpack.c.bf16 %v1295_v51, %v1295_v51  ;;  %v1296_v14 = vpack.c.bf16 %v1294_v3, %v1294_v3  ;;  %v2103_v33 = vld [vmem:[#allocation11 + $0xc0] sm:$0xff]   ;;  %v2106_v44 = vld [vmem:[#allocation11 + $0xd8] sm:$0xff]  }
 0x260   :  { %1916 = vmatprep.mubr.msk.bf16.mxu0 %vm2290_vm2, %v2289_v11  ;;  %1924 = vmatprep.mubr.msk.bf16.mxu1 %vm2290_vm2, %v2289_v11  ;;  %v948_v46 = vsel %vm526_vm3, %v947_v36, %v945_v42  ;;  %v1020_v47 = vsel %vm526_vm3, %v1019_v37, %v1017_v43  ;;  %v1162_v49 = vunpack.c.l.b16 %v1153_v39  ;;  %v1089_v0 = vunpack.c.l.b16 %v1080_v54  ;;  %v2105_v43 = vld [vmem:[#allocation11 + $0xc8] sm:$0xff]   ;;  %v2108_v54 = vld [vmem:[#allocation11 + $0xf0] sm:$0xff]  }
 0x261   :  { %v949_v56 = vpack.c.b16 %v948_v46, %v948_v46  ;;  %v1021_v57 = vpack.c.b16 %v1020_v47, %v1020_v47  ;;  %v1091_v58 = vrot.slane %v1090_v48, 7  ;;  %v1161_v1 = vunpack.c.l.b16 %v1152_v55  ;;  %v1510_v47 = vld [vmem:[#allocation2 + $0xe] sm:$0x1]  ;;  %v1582_v48 = vld [vmem:[#allocation2 + $0xf] sm:$0x1] }
 0x262   :  { %1915 = vmatpush3.bf16.msra.mxu0 %v2085_v59  ;;  %1923 = vmatpush3.bf16.msra.mxu1 %v2086_v60  ;;  %v1163_v59 = vrot.slane %v1162_v49, 7  ;;  %v1225_v60 = vpack.c.bf16 %v1223_v50, %v1223_v50  ;;  %v1441_v20 = vpack.c.bf16 %v1439_v9, %v1439_v9  ;;  %v1305_v24 = vunpack.c.l.b16 %v1296_v14 }
 0x263   :  { %1928 = vmatprep.subr.bf16.mxu0 %v2289_v11  ;;  %1936 = vmatprep.subr.bf16.mxu1 %v2289_v11  ;;  %v1092_v4 = vsel %vm526_vm3, %v1091_v58, %v1089_v0  ;;  %v1440_v36 = vpack.c.bf16 %v1438_v26, %v1438_v26  ;;  %v1585_v42 = vpack.c.bf16 %v1583_v32, %v1583_v32 }
 0x264   :  { %v1164_v5 = vsel %vm526_vm3, %v1163_v59, %v1161_v1  ;;  %v1234_v6 = vunpack.c.l.b16 %v1225_v60  ;;  %v1093_v15 = vpack.c.b16 %v1092_v4, %v1092_v4  ;;  %v1512_v55 = vpack.c.bf16 %v1510_v47, %v1510_v47 }
 0x265   :  { %1917 = vmatmul.mubr.msk.bf16.vlgmr.msra.gmra.mrb[20].mxu0 %vm107_vm0, %v661_v12  ;;  %1925 = vmatmul.mubr.msk.bf16.vlgmr.msra.gmra.mrb[8].mxu1 %vm107_vm0, %v733_v13  ;;  %v2100_v12 = vld [vmem:[#allocation11 + $0xb0] sm:$0xff]   ;;  %v1224_v13 = vpack.c.bf16 %v1222_v2, %v1222_v2  ;;  %v1165_v16 = vpack.c.b16 %v1164_v5, %v1164_v5  ;;  %v1449_v46 = vunpack.c.l.b16 %v1440_v36 }
 0x266   :  { %1929 = vmatpush3.bf16.msra.mxu0 %v2087_v7  ;;  %1937 = vmatpush3.bf16.msra.mxu1 %v2088_v8  ;;  %v1306_v7 = vunpack.c.l.b16 %v1297_v61  ;;  %v1367_v8 = vld [vmem:[#allocation2 + $0x1c] sm:$0x1]  ;;  %v1235_v17 = vrot.slane %v1234_v6, 7  ;;  %v2109_v61 = vld [vmem:[#allocation11 + $0xe8] sm:$0xff]  }
 0x267   :  { %1930 = vmatprep.subr.bf16.mxu0 %v2289_v11  ;;  %1938 = vmatprep.subr.bf16.mxu1 %v2289_v11  ;;  %v1233_v23 = vunpack.c.l.b16 %v1224_v13 }
 0x268   :  { %1932 = vmatprep.mubr.msk.bf16.mxu0 %vm2290_vm2, %v2289_v11  ;;  %1940 = vmatprep.mubr.msk.bf16.mxu1 %vm2290_vm2, %v2289_v11 }
 0x269   :  { %v1236_v27 = vsel %vm526_vm3, %v1235_v17, %v1233_v23 }
 0x26a   :  { %1931 = vmatpush3.bf16.msra.mxu0 %v2089_v18  ;;  %1939 = vmatpush3.bf16.msra.mxu1 %v2090_v19  ;;  %v1307_v18 = vrot.slane %v1306_v7, 7  ;;  %v1369_v19 = vpack.c.bf16 %v1367_v8, %v1367_v8  ;;  %v1237_v37 = vpack.c.b16 %v1236_v27, %v1236_v27 }
 0x26b   :  { %1944 = vmatprep.subr.bf16.mxu0 %v2289_v11  ;;  %1952 = vmatprep.subr.bf16.mxu1 %v2289_v11 }
 0x26c   :  { %v1308_v28 = vsel %vm526_vm3, %v1307_v18, %v1305_v24  ;;  %v1378_v29 = vunpack.c.l.b16 %v1369_v19 }
 0x26d   :  { %1933 = vmatmul.mubr.msk.bf16.vlgmr.msra.gmra.mrb[24].mxu0 %vm107_vm0, %v805_v34  ;;  %1941 = vmatmul.mubr.msk.bf16.vlgmr.msra.gmra.mrb[12].mxu1 %vm107_vm0, %v877_v35  ;;  %v2104_v34 = vld [vmem:[#allocation11 + $0xd0] sm:$0xff]   ;;  %v1368_v35 = vpack.c.bf16 %v1366_v25, %v1366_v25  ;;  %v1309_v38 = vpack.c.b16 %v1308_v28, %v1308_v28 }
 0x26e   :  { %1945 = vmatpush3.bf16.msra.mxu0 %v2091_v30  ;;  %1953 = vmatpush3.bf16.msra.mxu1 %v2092_v31  ;;  %v1450_v30 = vunpack.c.l.b16 %v1441_v20  ;;  %v1511_v31 = vld [vmem:[#allocation2 + $0x1e] sm:$0x1]  ;;  %v1379_v39 = vrot.slane %v1378_v29, 7 }
 0x26f   :  { %1946 = vmatprep.subr.bf16.mxu0 %v2289_v11  ;;  %1954 = vmatprep.subr.bf16.mxu1 %v2289_v11  ;;  %v1377_v45 = vunpack.c.l.b16 %v1368_v35 }
 0x270   :  { %1948 = vmatprep.mubr.msk.bf16.mxu0 %vm2290_vm2, %v2289_v11  ;;  %1956 = vmatprep.mubr.msk.bf16.mxu1 %vm2290_vm2, %v2289_v11 }
 0x271   :  { %v1380_v49 = vsel %vm526_vm3, %v1379_v39, %v1377_v45 }
 0x272   :  { %1947 = vmatpush3.bf16.msra.mxu0 %v2093_v40  ;;  %1955 = vmatpush3.bf16.msra.mxu1 %v2094_v41  ;;  %v1451_v40 = vrot.slane %v1450_v30, 7  ;;  %v1513_v41 = vpack.c.bf16 %v1511_v31, %v1511_v31 }
 0x273   :  { %1960 = vmatprep.subr.bf16.mxu0 %v2289_v11  ;;  %1968 = vmatprep.subr.bf16.mxu1 %v2289_v11 }
 0x274   :  { %v1452_v50 = vsel %vm526_vm3, %v1451_v40, %v1449_v46  ;;  %v1522_v51 = vunpack.c.l.b16 %v1513_v41 }
 0x275   :  { %1949 = vmatmul.mubr.msk.bf16.vlgmr.msra.gmra.mrb[28].mxu0 %vm107_vm0, %v949_v56  ;;  %1957 = vmatmul.mubr.msk.bf16.vlgmr.msra.gmra.mrb[16].mxu1 %vm107_vm0, %v1021_v57  ;;  %v1584_v56 = vpack.c.bf16 %v1582_v48, %v1582_v48  ;;  %v1381_v57 = vpack.c.b16 %v1380_v49, %v1380_v49  ;;  %v1453_v58 = vpack.c.b16 %v1452_v50, %v1452_v50 }
 0x276   :  { %1961 = vmatpush3.bf16.msra.mxu0 %v2095_v52  ;;  %1969 = vmatpush3.bf16.msra.mxu1 %v2096_v53  ;;  %v1594_v52 = vunpack.c.l.b16 %v1585_v42  ;;  %v2107_v53 = vld [vmem:[#allocation11 + $0xe0] sm:$0xff]   ;;  %v1523_v59 = vrot.slane %v1522_v51, 7 }
 0x277   :  { %1962 = vmatprep.subr.bf16.mxu0 %v2289_v11  ;;  %1970 = vmatprep.subr.bf16.mxu1 %v2289_v11  ;;  %v1593_v0 = vunpack.c.l.b16 %v1584_v56 }
 0x278   :  { %1964 = vmatprep.mubr.msk.bf16.mxu0 %vm2290_vm2, %v2289_v11  ;;  %1972 = vmatprep.mubr.msk.bf16.mxu1 %vm2290_vm2, %v2289_v11  ;;  %v1595_v60 = vrot.slane %v1594_v52, 7 }
 0x27a   :  { %1963 = vmatpush3.bf16.msra.mxu0 %v2097_v62  ;;  %1971 = vmatpush3.bf16.msra.mxu1 %v2098_v63  ;;  %v2110_v62 = vld [vmem:[#allocation11 + $0xf8] sm:$0xff]   ;;  %v1521_v63 = vunpack.c.l.b16 %v1512_v55  ;;  %v1596_v2 = vsel %vm526_vm3, %v1595_v60, %v1593_v0 }
 0x27b   :  { %1976 = vmatprep.subr.bf16.mxu0 %v2289_v11  ;;  %1984 = vmatprep.subr.bf16.mxu1 %v2289_v11  ;;  %v1597_v4 = vpack.c.b16 %v1596_v2, %v1596_v2 }
 0x27c   :  { %v1524_v1 = vsel %vm526_vm3, %v1523_v59, %v1521_v63 }
 0x27d   :  { %1965 = vmatmul.mubr.msk.bf16.vlgmr.msra.gmra.mrb[32].mxu0 %vm107_vm0, %v1093_v15  ;;  %1973 = vmatmul.mubr.msk.bf16.vlgmr.msra.gmra.mrb[20].mxu1 %vm107_vm0, %v1165_v16  ;;  %v1525_v3 = vpack.c.b16 %v1524_v1, %v1524_v1 }
 0x27e   :  { %1977 = vmatpush3.bf16.msra.mxu0 %v2099_v10  ;;  %1985 = vmatpush3.bf16.msra.mxu1 %v2100_v12 }
 0x27f   :  { %1978 = vmatprep.subr.bf16.mxu0 %v2289_v11  ;;  %1986 = vmatprep.subr.bf16.mxu1 %v2289_v11 }
 0x280   :  { %1980 = vmatprep.mubr.msk.bf16.mxu0 %vm2290_vm2, %v2289_v11  ;;  %1988 = vmatprep.mubr.msk.bf16.mxu1 %vm2290_vm2, %v2289_v11 }
 0x282   :  { %1979 = vmatpush3.bf16.msra.mxu0 %v2101_v21  ;;  %1987 = vmatpush3.bf16.msra.mxu1 %v2102_v22 }
 0x283   :  { %1992 = vmatprep.subr.bf16.mxu0 %v2289_v11  ;;  %2000 = vmatprep.subr.bf16.mxu1 %v2289_v11 }
 0x285   :  { %1981 = vmatmul.mubr.msk.bf16.vlgmr.msra.gmra.mrb[36].mxu0 %vm107_vm0, %v1237_v37  ;;  %1989 = vmatmul.mubr.msk.bf16.vlgmr.msra.gmra.mrb[24].mxu1 %vm107_vm0, %v1309_v38 }
 0x286   :  { %1993 = vmatpush3.bf16.msra.mxu0 %v2103_v33  ;;  %2001 = vmatpush3.bf16.msra.mxu1 %v2104_v34 }
 0x287   :  { %1994 = vmatprep.subr.bf16.mxu0 %v2289_v11  ;;  %2002 = vmatprep.subr.bf16.mxu1 %v2289_v11 }
 0x288   :  { %1996 = vmatprep.mubr.msk.bf16.mxu0 %vm2290_vm2, %v2289_v11  ;;  %2004 = vmatprep.mubr.msk.bf16.mxu1 %vm2290_vm2, %v2289_v11 }
 0x28a   :  { %1995 = vmatpush3.bf16.msra.mxu0 %v2105_v43  ;;  %2003 = vmatpush3.bf16.msra.mxu1 %v2106_v44 }
 0x28b   :  { %2008 = vmatprep.subr.bf16.mxu0 %v2289_v11  ;;  %2016 = vmatprep.subr.bf16.mxu1 %v2289_v11 }
 0x28d   :  { %1997 = vmatmul.mubr.msk.bf16.vlgmr.msra.gmra.mrb[40].mxu0 %vm107_vm0, %v1381_v57  ;;  %2005 = vmatmul.mubr.msk.bf16.vlgmr.msra.gmra.mrb[28].mxu1 %vm107_vm0, %v1453_v58 }
 0x28e   :  { %2009 = vmatpush3.bf16.msra.mxu0 %v2107_v53  ;;  %2017 = vmatpush3.bf16.msra.mxu1 %v2108_v54 }
 0x28f   :  { %2010 = vmatprep.subr.bf16.mxu0 %v2289_v11  ;;  %2018 = vmatprep.subr.bf16.mxu1 %v2289_v11 }
 0x290   :  { %2012 = vmatprep.mubr.msk.bf16.mxu0 %vm2290_vm2, %v2289_v11  ;;  %2020 = vmatprep.mubr.msk.bf16.mxu1 %vm2290_vm2, %v2289_v11 }
 0x292   :  { %2011 = vmatpush3.bf16.msra.mxu0 %v2109_v61  ;;  %2019 = vmatpush3.bf16.msra.mxu1 %v2110_v62 }
 0x295   :  { %2013 = vmatmul.mubr.msk.bf16.vlgmr.msra.gmra.mrb[44].mxu0 %vm107_vm0, %v1525_v3  ;;  %2021 = vmatmul.mubr.msk.bf16.vlgmr.msra.gmra.mrb[32].mxu1 %vm107_vm0, %v1597_v4 }
 0x330   :  { %v578_v5 = vpop.f32.mrb[16].mxu0  ;;  %v640_v6 = vpop.f32.mrb[4].mxu1 }
 0x331   :  { %v641_v7 = vadd.f32 %v640_v6, %v578_v5  ;;  %v1902_v8 = vpop.f32.mrb[17].mxu0  ;;  %v1910_v9 = vpop.f32.mrb[5].mxu1 }
 0x332   :  { %v581_v10 = vpop.f32.mrb[18].mxu0  ;;  %v643_v12 = vpop.f32.mrb[6].mxu1 }
 0x333   :  { %v1903_v11 = vpop.f32.mrb[19].mxu0  ;;  %v1911_v13 = vpop.f32.mrb[7].mxu1 }
 0x338   :  { %v711_v14 = vpop.f32.mrb[20].mxu0  ;;  %v783_v15 = vpop.f32.mrb[8].mxu1 }
 0x339   :  { %v717_v16 = vadd.f32 %v711_v14, %v641_v7  ;;  %v1918_v17 = vpop.f32.mrb[21].mxu0  ;;  %v1926_v18 = vpop.f32.mrb[9].mxu1 }
 0x33a   :  { %v714_v19 = vpop.f32.mrb[22].mxu0  ;;  %v786_v20 = vpop.f32.mrb[10].mxu1 }
 0x33b   :  { %v789_v21 = vadd.f32 %v783_v15, %v717_v16  ;;  %v1919_v22 = vpop.f32.mrb[23].mxu0  ;;  %v1927_v23 = vpop.f32.mrb[11].mxu1  ;;  %v1758_v15 = vld [vmem:[#allocation12] ss:$0 sm:$0xff] }
 0x340   :  { %v855_v24 = vpop.f32.mrb[24].mxu0  ;;  %v927_v25 = vpop.f32.mrb[12].mxu1 }
 0x341   :  { %v861_v26 = vadd.f32 %v855_v24, %v789_v21  ;;  %v1934_v27 = vpop.f32.mrb[25].mxu0  ;;  %v1942_v28 = vpop.f32.mrb[13].mxu1 }
 0x342   :  { %v858_v29 = vpop.f32.mrb[26].mxu0  ;;  %v930_v30 = vpop.f32.mrb[14].mxu1 }
 0x343   :  { %v933_v31 = vadd.f32 %v927_v25, %v861_v26  ;;  %v1935_v32 = vpop.f32.mrb[27].mxu0  ;;  %v1943_v33 = vpop.f32.mrb[15].mxu1 }
 0x348   :  { %v999_v34 = vpop.f32.mrb[28].mxu0  ;;  %v1071_v35 = vpop.f32.mrb[16].mxu1 }
 0x349   :  { %v1005_v36 = vadd.f32 %v999_v34, %v933_v31  ;;  %v1950_v37 = vpop.f32.mrb[29].mxu0  ;;  %v1958_v38 = vpop.f32.mrb[17].mxu1 }
 0x34a   :  { %v1002_v39 = vpop.f32.mrb[30].mxu0  ;;  %v1074_v40 = vpop.f32.mrb[18].mxu1 }
 0x34b   :  { %v1077_v41 = vadd.f32 %v1071_v35, %v1005_v36  ;;  %v1951_v42 = vpop.f32.mrb[31].mxu0  ;;  %v1959_v43 = vpop.f32.mrb[19].mxu1 }
 0x350   :  { %v1143_v44 = vpop.f32.mrb[32].mxu0  ;;  %v1215_v45 = vpop.f32.mrb[20].mxu1 }
 0x351   :  { %v1149_v46 = vadd.f32 %v1143_v44, %v1077_v41  ;;  %v1966_v47 = vpop.f32.mrb[33].mxu0  ;;  %v1974_v48 = vpop.f32.mrb[21].mxu1 }
 0x352   :  { %v1146_v49 = vpop.f32.mrb[34].mxu0  ;;  %v1218_v50 = vpop.f32.mrb[22].mxu1 }
 0x353   :  { %v1221_v51 = vadd.f32 %v1215_v45, %v1149_v46  ;;  %v1967_v52 = vpop.f32.mrb[35].mxu0  ;;  %v1975_v53 = vpop.f32.mrb[23].mxu1 }
 0x358   :  { %v1287_v54 = vpop.f32.mrb[36].mxu0  ;;  %v1359_v55 = vpop.f32.mrb[24].mxu1 }
 0x359   :  { %v1293_v56 = vadd.f32 %v1287_v54, %v1221_v51  ;;  %v1982_v57 = vpop.f32.mrb[37].mxu0  ;;  %v1990_v58 = vpop.f32.mrb[25].mxu1 }
 0x35a   :  { %v1290_v59 = vpop.f32.mrb[38].mxu0  ;;  %v1362_v60 = vpop.f32.mrb[26].mxu1 }
 0x35b   :  { %v1365_v61 = vadd.f32 %v1359_v55, %v1293_v56  ;;  %v1983_v62 = vpop.f32.mrb[39].mxu0  ;;  %v1991_v63 = vpop.f32.mrb[27].mxu1 }
 0x360   :  { %v1431_v0 = vpop.f32.mrb[40].mxu0  ;;  %v1503_v1 = vpop.f32.mrb[28].mxu1 }
 0x361   :  { %v1437_v2 = vadd.f32 %v1431_v0, %v1365_v61  ;;  %v1998_v3 = vpop.f32.mrb[41].mxu0  ;;  %v2006_v4 = vpop.f32.mrb[29].mxu1 }
 0x362   :  { %v1434_v5 = vpop.f32.mrb[42].mxu0  ;;  %v1506_v6 = vpop.f32.mrb[30].mxu1 }
 0x363   :  { %v1509_v7 = vadd.f32 %v1503_v1, %v1437_v2  ;;  %v1999_v8 = vpop.f32.mrb[43].mxu0  ;;  %v2007_v9 = vpop.f32.mrb[31].mxu1 }
 0x368   :  { %v1575_v10 = vpop.f32.mrb[44].mxu0  ;;  %v1647_v12 = vpop.f32.mrb[32].mxu1 }
 0x369   :  { %v1581_v11 = vadd.f32 %v1575_v10, %v1509_v7  ;;  %v2014_v13 = vpop.f32.mrb[45].mxu0  ;;  %v2022_v14 = vpop.f32.mrb[33].mxu1 }
 0x36a   :  { %v1578_v16 = vpop.f32.mrb[46].mxu0  ;;  %v1650_v17 = vpop.f32.mrb[34].mxu1 }
 0x36b   :  { %v1653_v18 = vadd.f32 %v1647_v12, %v1581_v11  ;;  %v2015_v19 = vpop.f32.mrb[47].mxu0  ;;  %v2023_v20 = vpop.f32.mrb[35].mxu1 }
 0x36d   :  { %v1661_v21 = vadd.f32 %v1758_v15, %v1653_v18 }
 0x36f   :  { %v1759_v22 = vmul.f32 -1.442695, %v1661_v21 }
 0x371   :  { %2111 = vpow2.f32 %v1759_v22 }
 0x37b   :  { %v2112_v23 = vpop.eup %2111 }
 0x37c   :  { %v1665_v24 = vadd.f32 1.0, %v2112_v23 }
 0x37e   :  { %2113 = vrcp.f32 %v1665_v24 }
 0x388   :  { %v2114_v25 = vpop.eup %2113 }
 0x389   :  { %1668 = vst [vmem:[#allocation14] sm:$0x3] %v2114_v25 }
 0x38a   :  { %2258 = shalt.err (!%p2255_p10)
}
 0x38b   :  { %s2259_s25 = scalar_lea.hbm %s2575_s6, 32 }
 0x38c   :  { %p2260_p11 = scmp.ne.s32.totalorder %s2575_s6, %s2259_s25  ;;  %p2263_p12 = scmp.lt.u32.totalorder %s2259_s25, %s2575_s6 }
 0x38e   :  { %p2265_p13 = pnand %p2263_p12, %p2260_p11 }
 0x390   :  { %2268 = shalt.err (!%p2265_p13)
}
 0x391   :  { %1678 = dma.vmem_to_hbm [thread:$0]  %s1676_s10, 32, %s2575_s6, [#allocation5]  }
 0x392   :  { %2277 = dma.done.wait [#allocation5], 32  }
 0x393   :  { %2278 = vsyncadd [#allocation5], 4294967264 }
 0x394   :  { %1682 = vsyncpa [#allocation4], 1 }
 0x395   :  { %1683 = vsyncpa [#allocation7], 1 }
 0x396   :  { %1684 = vsyncpa [#allocation10], 1 }
 0x397   :  { %1685 = vsyncpa [#allocation13], 1 }
 0x398   :  { %1686 = vsyncpa [#allocation5], 1 }

</bundles_post_ra>
